<compile_context>
chip_gen: v7x
topology: tpu7x:2x2x1
jax: 0.10.0
libtpu: 0.0.40
codegen_flags: <defaults>
</compile_context>

<pallas_src>
import numpy as np
import jax
import jax.numpy as jnp
from jax import lax
from jax.experimental import pallas as pl
from jax.experimental.pallas import tpu as pltpu

INIT_DIM = 2
LN_EPS = 1e-5
ADAIN_EPS = 1e-9
LRELU_SLOPE = 0.01


# --------------------------------------------------------------------------- specs

def _full_spec(shape):
    # Whole-array block (satisfies the (8,128) rule since block == full array).
    n = len(shape)
    return pl.BlockSpec(shape, lambda i, _n=n: (0,) * _n)


# --------------------------------------------------------------------------- in-kernel math (VMEM values)

def _conv_valid(xp, wf, b, k, H, W):
    """Valid k x k convolution of a pre-padded NHWC tensor.

    xp: (B, H+k-1, W+k-1, Cin) f32 value; wf: (k*k, Cin, Cout) bf16; b: (1, Cout) f32.
    Implemented as k*k shifted-slice matmuls accumulated in f32 (bf16 MXU operands).
    """
    B = xp.shape[0]
    Cin = xp.shape[3]
    Cout = wf.shape[2]
    acc = None
    for dy in range(k):
        for dx in range(k):
            patch = xp[:, dy:dy + H, dx:dx + W, :].reshape(B * H * W, Cin)
            part = jnp.dot(patch.astype(jnp.bfloat16), wf[dy * k + dx],
                           preferred_element_type=jnp.float32)
            acc = part if acc is None else acc + part
    return (acc + b).reshape(B, H, W, Cout)


def _conv3x3_same(x, wf, b):
    """'Same' 3x3 conv (stride 1, pad 1); zero padding built with in-VMEM concatenates."""
    B, H, W, Cin = x.shape
    zh = jnp.zeros((B, 1, W, Cin), x.dtype)
    xp = jnp.concatenate([zh, x, zh], axis=1)
    zw = jnp.zeros((B, H + 2, 1, Cin), x.dtype)
    xp = jnp.concatenate([zw, xp, zw], axis=2)
    return _conv_valid(xp, wf, b, 3, H, W)


def _ln_lrelu(x, g, b):
    """LayerNorm over (C,H,W) per sample (biased var, eps=1e-5) then LeakyReLU(0.01).

    x: (B,H,W,C) f32; g, b: (1,H,W,C) f32 (NHWC-ordered affine params).
    """
    n = x.shape[1] * x.shape[2] * x.shape[3]
    s = jnp.sum(jnp.sum(jnp.sum(x, axis=3, keepdims=True), axis=2, keepdims=True),
                axis=1, keepdims=True)
    mu = s / n
    d = x - mu
    s2 = jnp.sum(jnp.sum(jnp.sum(d * d, axis=3, keepdims=True), axis=2, keepdims=True),
                 axis=1, keepdims=True)
    y = d * lax.rsqrt(s2 / n + LN_EPS) * g + b
    return jnp.maximum(y, LRELU_SLOPE * y)          # LeakyReLU (slope < 1)


def _adain(x, ys, yb):
    """AdaIN: per-(sample, channel) stats over H*W, unbiased std + eps (torch.std).

    x: (B,H,W,C) f32; ys, yb: (B,C) f32.
    """
    B, H, W, C = x.shape
    s = jnp.sum(jnp.sum(x, axis=2, keepdims=True), axis=1, keepdims=True)     # (B,1,1,C)
    mu = s / (H * W)
    d = x - mu
    s2 = jnp.sum(jnp.sum(d * d, axis=2, keepdims=True), axis=1, keepdims=True)
    std = jnp.sqrt(s2 / (H * W - 1)) + ADAIN_EPS
    return (d / std) * ys.reshape(B, 1, 1, C) + yb.reshape(B, 1, 1, C)


# --------------------------------------------------------------------------- fused per-block kernel

def build_block_kernel(*, first, last, n_layers, c):
    """One fused kernel for a whole SynthesisBlock (plus the to_rgb head if `last`)."""

    def kernel(*refs):
        pos = [0]

        def nxt():
            r = refs[pos[0]]
            pos[0] += 1
            return r[...]

        x_or_zp = nxt()                                  # first: learned const (1,H,W,c)
        style = nxt()                                    # (B, dim_style)
        n1 = nxt()                                       # (B, H, W, n_noise)
        n2 = nxt()

        if not first:
            up_wf, up_b = nxt(), nxt()
            cv_wf, cv_b, cv_g, cv_be = nxt(), nxt(), nxt(), nxt()
        layer_p = [(nxt(), nxt(), nxt(), nxt()) for _ in range(n_layers)]
        A_w, A_b = nxt(), nxt()
        B1_wf, B1_b = nxt(), nxt()
        B2_wf, B2_b = nxt(), nxt()
        if last:
            rgb_w, rgb_b = nxt(), nxt()
        out_ref = refs[pos[0]]

        if first:
            x = x_or_zp
        else:
            # ConvTranspose2d(2c, c, 4, 2, 1) == valid 4x4 conv (flipped weights) on the
            # dilated + padded previous activation prepared by the wrapper.
            H = x_or_zp.shape[1] - 3
            W = x_or_zp.shape[2] - 3
            x = _conv_valid(x_or_zp, up_wf, up_b, 4, H, W)
            # Dropout -> Conv3x3 -> LayerNorm((c,H,W)) -> LeakyReLU  (replaces x)
            # TODO(synk): Dropout layers are identity here (inference / p=0.0 semantics).
            x = _ln_lrelu(_conv3x3_same(x, cv_wf, cv_b), cv_g, cv_be)

        # Fused style projections: y = [A1(w) | A2(w)] = [ys1 | yb1 | ys2 | yb2]
        y = jnp.dot(style.astype(jnp.bfloat16), A_w,
                    preferred_element_type=jnp.float32) + A_b          # (B, 4c)

        # x = AdaIN(x + B1(n1), y1)
        x = _adain(x + _conv3x3_same(n1, B1_wf, B1_b), y[:, :c], y[:, c:2 * c])

        # residual conv blocks: x = x + LeakyReLU(LN(Conv(Dropout(x))))
        for wf, b, g, be in layer_p:
            x = x + _ln_lrelu(_conv3x3_same(x, wf, b), g, be)

        # x = AdaIN(x + B2(n2), y2)
        x = _adain(x + _conv3x3_same(n2, B2_wf, B2_b), y[:, 2 * c:3 * c], y[:, 3 * c:])

        if last:
            B, H, W, C = x.shape
            rgb = jnp.dot(x.reshape(B * H * W, C).astype(jnp.bfloat16), rgb_w,
                          preferred_element_type=jnp.float32) + rgb_b
            out_ref[...] = jnp.tanh(rgb).reshape(B, H, W, 3)
        else:
            out_ref[...] = x

    return kernel


# --------------------------------------------------------------------------- parameters

def _uniform(key, shape, fan_in):
    bound = float(1.0 / np.sqrt(fan_in))
    return jax.random.uniform(key, shape, jnp.float32, -bound, bound)


def _prep_conv_w(w_oihw):
    """torch Conv2d weight (Cout,Cin,k,k) -> (k*k, Cin, Cout) bf16, (dy,dx) tap-major."""
    cout, cin, k, _ = w_oihw.shape
    return jnp.transpose(w_oihw, (2, 3, 1, 0)).reshape(k * k, cin, cout).astype(jnp.bfloat16)


def _prep_convT_w(w_iohw):
    """torch ConvTranspose2d weight (Cin,Cout,k,k) -> spatially flipped (k*k,Cin,Cout) bf16."""
    cin, cout, k, _ = w_iohw.shape
    wc = w_iohw[:, :, ::-1, ::-1]
    return jnp.transpose(wc, (2, 3, 0, 1)).reshape(k * k, cin, cout).astype(jnp.bfloat16)


def init_params(key, dim_final, n_channels, n_layers_block, n_noise, dim_style):
    n_blocks = int(np.log2(dim_final) - np.log2(INIT_DIM)) + 1
    params = {"n_noise": n_noise}

    key, k = jax.random.split(key)
    cnst = jax.random.normal(k, (n_channels, INIT_DIM, INIT_DIM), jnp.float32)
    params["cnst"] = jnp.transpose(cnst, (1, 2, 0))[None]          # (1, 2, 2, C) NHWC

    blocks = []
    for bid in range(n_blocks):
        dim = INIT_DIM << bid
        c = n_channels >> bid
        bp = {"dim": dim, "c": c, "first": bid == 0, "last": bid == n_blocks - 1}
        if bid != 0:
            key, k1, k2, k3, k4 = jax.random.split(key, 5)
            bp["up_wf"] = _prep_convT_w(_uniform(k1, (2 * c, c, 4, 4), 2 * c * 16))
            bp["up_b"] = _uniform(k2, (1, c), 2 * c * 16)
            bp["conv_wf"] = _prep_conv_w(_uniform(k3, (c, c, 3, 3), c * 9))
            bp["conv_b"] = _uniform(k4, (1, c), c * 9)
            bp["conv_ln_g"] = jnp.ones((1, dim, dim, c), jnp.float32)   # LayerNorm defaults
            bp["conv_ln_b"] = jnp.zeros((1, dim, dim, c), jnp.float32)
        layers = []
        for _ in range(n_layers_block):
            key, k1, k2 = jax.random.split(key, 3)
            layers.append({
                "wf": _prep_conv_w(_uniform(k1, (c, c, 3, 3), c * 9)),
                "b": _uniform(k2, (1, c), c * 9),
                "ln_g": jnp.ones((1, dim, dim, c), jnp.float32),
                "ln_b": jnp.zeros((1, dim, dim, c), jnp.float32),
            })
        bp["layers"] = layers
        key, k1, k2, k3, k4, k5, k6, k7, k8 = jax.random.split(key, 9)
        A1_w = _uniform(k1, (dim_style, 2 * c), dim_style)             # stored (in, out)
        A2_w = _uniform(k3, (dim_style, 2 * c), dim_style)
        A1_b = _uniform(k2, (2 * c,), dim_style)
        A2_b = _uniform(k4, (2 * c,), dim_style)
        bp["A_w"] = jnp.concatenate([A1_w, A2_w], axis=1).astype(jnp.bfloat16)   # (ds, 4c)
        bp["A_b"] = jnp.concatenate([A1_b, A2_b])[None]                          # (1, 4c)
        bp["B1_wf"] = _prep_conv_w(_uniform(k5, (c, n_noise, 3, 3), n_noise * 9))
        bp["B1_b"] = _uniform(k6, (1, c), n_noise * 9)
        bp["B2_wf"] = _prep_conv_w(_uniform(k7, (c, n_noise, 3, 3), n_noise * 9))
        bp["B2_b"] = _uniform(k8, (1, c), n_noise * 9)
        blocks.append(bp)
    params["blocks"] = blocks

    c_last = n_channels >> (n_blocks - 1)
    key, k1, k2 = jax.random.split(key, 3)
    rgb_w = _uniform(k1, (3, c_last, 1, 1), c_last)
    params["rgb_wf"] = rgb_w[:, :, 0, 0].T.astype(jnp.bfloat16)        # (c_last, 3)
    params["rgb_b"] = _uniform(k2, (1, 3), c_last)
    return params


# --------------------------------------------------------------------------- forward

def synthesis_block_apply(x, style, n1, n2, bp, rgb=None):
    """Run one fused SynthesisBlock pallas_call.  x is NHWC (or the (1,2,2,C) const)."""
    first, last, c, dim = bp["first"], bp["last"], bp["c"], bp["dim"]
    B = style.shape[0]

    if first:
        x_in = x
    else:
        Bi, Hin, Win, Cin = x.shape
        # Dilate (stride 2) + pad (2) once; the kernel does the 4x4 valid conv.
        zp = jnp.zeros((Bi, 2 * Hin + 3, 2 * Win + 3, Cin), jnp.float32)
        x_in = zp.at[:, 2:2 + 2 * Hin:2, 2:2 + 2 * Win:2, :].set(x)

    inputs = [x_in, style, n1, n2]
    if not first:
        inputs += [bp["up_wf"], bp["up_b"], bp["conv_wf"], bp["conv_b"],
                   bp["conv_ln_g"], bp["conv_ln_b"]]
    for lp in bp["layers"]:
        inputs += [lp["wf"], lp["b"], lp["ln_g"], lp["ln_b"]]
    inputs += [bp["A_w"], bp["A_b"], bp["B1_wf"], bp["B1_b"], bp["B2_wf"], bp["B2_b"]]
    if last:
        inputs += list(rgb)

    out_c = 3 if last else c
    out_shape = (B, dim, dim, out_c)
    kernel = build_block_kernel(first=first, last=last, n_layers=len(bp["layers"]), c=c)
    return pl.pallas_call(
        kernel,
        out_shape=jax.ShapeDtypeStruct(out_shape, jnp.float32),
        grid=(1,),
        in_specs=[_full_spec(a.shape) for a in inputs],
        out_specs=_full_spec(out_shape),
        compiler_params=pltpu.CompilerParams(dimension_semantics=("arbitrary",)),
    )(*inputs)


def synthesis_forward(params, w_all, noise_key):
    """w_all: (n_blocks, batch, dim_style) -> (batch, 3, dim_final, dim_final) NCHW."""
    B = w_all.shape[1]
    n_noise = params["n_noise"]
    x = params["cnst"]                                    # (1, 2, 2, C), broadcast in-kernel
    for i, bp in enumerate(params["blocks"]):
        dim = bp["dim"]
        noise_key, kn1, kn2 = jax.random.split(noise_key, 3)
        n1 = jax.random.normal(kn1, (B, dim, dim, n_noise), jnp.float32)
        n2 = jax.random.normal(kn2, (B, dim, dim, n_noise), jnp.float32)
        rgb = (params["rgb_wf"], params["rgb_b"]) if bp["last"] else None
        x = synthesis_block_apply(x, w_all[i], n1, n2, bp, rgb=rgb)
    return jnp.transpose(x, (0, 3, 1, 2))                 # NHWC -> NCHW (match PyTorch)


# --------------------------------------------------------------------------- main

if __name__ == "__main__":
    DIM_FINAL = 8        # n_blocks = 3; spatial: 2 -> 4 -> 8
    N_CHANNELS = 16      # channels: 16 -> 8 -> 4
    N_LAYERS_BLOCK = 1
    N_NOISE = 4
    DIM_STYLE = 8
    BATCH = 2

    key = jax.random.PRNGKey(0)
    kp, kw, kn = jax.random.split(key, 3)

    params = init_params(kp, DIM_FINAL, N_CHANNELS, N_LAYERS_BLOCK, N_NOISE, DIM_STYLE)
    n_blocks = len(params["blocks"])
    w = jax.random.normal(kw, (n_blocks, BATCH, DIM_STYLE), jnp.float32)

    out = synthesis_forward(params, w, kn)
    out = jax.block_until_ready(out)

    assert out.shape == (BATCH, 3, DIM_FINAL, DIM_FINAL), out.shape
    assert bool(jnp.all(jnp.isfinite(out)))
    print("KERNEL_OK")
</pallas_src>

<mosaic_0001>
module attributes {stable_mosaic.version = 11 : i64} {
  func.func @kernel(%arg0: i32, %arg1: memref<1x2x2x16xf32, #tpu.memory_space<vmem>>, %arg2: memref<2x8xf32, #tpu.memory_space<vmem>>, %arg3: memref<2x2x2x4xf32, #tpu.memory_space<vmem>>, %arg4: memref<2x2x2x4xf32, #tpu.memory_space<vmem>>, %arg5: memref<9x16x16xbf16, #tpu.memory_space<vmem>>, %arg6: memref<1x16xf32, #tpu.memory_space<vmem>>, %arg7: memref<1x2x2x16xf32, #tpu.memory_space<vmem>>, %arg8: memref<1x2x2x16xf32, #tpu.memory_space<vmem>>, %arg9: memref<8x64xbf16, #tpu.memory_space<vmem>>, %arg10: memref<1x64xf32, #tpu.memory_space<vmem>>, %arg11: memref<9x4x16xbf16, #tpu.memory_space<vmem>>, %arg12: memref<1x16xf32, #tpu.memory_space<vmem>>, %arg13: memref<9x4x16xbf16, #tpu.memory_space<vmem>>, %arg14: memref<1x16xf32, #tpu.memory_space<vmem>>, %arg15: memref<2x2x2x16xf32, #tpu.memory_space<vmem>>) attributes {dimension_semantics = [#tpu.dimension_semantics<arbitrary>], iteration_bounds = array<i64: 1>, scalar_prefetch = 0 : i64, scratch_operands = 0 : i64, tpu.core_type = #tpu.core_type<tc>, window_params = [{pipeline_mode = #tpu.pipeline_mode<synchronous>, transform_indices = @transform_0, window_bounds = array<i64: 1, 2, 2, 16>}, {pipeline_mode = #tpu.pipeline_mode<synchronous>, transform_indices = @transform_1, window_bounds = array<i64: 2, 8>}, {pipeline_mode = #tpu.pipeline_mode<synchronous>, transform_indices = @transform_2, window_bounds = array<i64: 2, 2, 2, 4>}, {pipeline_mode = #tpu.pipeline_mode<synchronous>, transform_indices = @transform_3, window_bounds = array<i64: 2, 2, 2, 4>}, {pipeline_mode = #tpu.pipeline_mode<synchronous>, transform_indices = @transform_4, window_bounds = array<i64: 9, 16, 16>}, {pipeline_mode = #tpu.pipeline_mode<synchronous>, transform_indices = @transform_5, window_bounds = array<i64: 1, 16>}, {pipeline_mode = #tpu.pipeline_mode<synchronous>, transform_indices = @transform_6, window_bounds = array<i64: 1, 2, 2, 16>}, {pipeline_mode = #tpu.pipeline_mode<synchronous>, transform_indices = @transform_7, window_bounds = array<i64: 1, 2, 2, 16>}, {pipeline_mode = #tpu.pipeline_mode<synchronous>, transform_indices = @transform_8, window_bounds = array<i64: 8, 64>}, {pipeline_mode = #tpu.pipeline_mode<synchronous>, transform_indices = @transform_9, window_bounds = array<i64: 1, 64>}, {pipeline_mode = #tpu.pipeline_mode<synchronous>, transform_indices = @transform_10, window_bounds = array<i64: 9, 4, 16>}, {pipeline_mode = #tpu.pipeline_mode<synchronous>, transform_indices = @transform_11, window_bounds = array<i64: 1, 16>}, {pipeline_mode = #tpu.pipeline_mode<synchronous>, transform_indices = @transform_12, window_bounds = array<i64: 9, 4, 16>}, {pipeline_mode = #tpu.pipeline_mode<synchronous>, transform_indices = @transform_13, window_bounds = array<i64: 1, 16>}, {pipeline_mode = #tpu.pipeline_mode<synchronous>, transform_indices = @transform_14, window_bounds = array<i64: 2, 2, 2, 16>}]} {
    %c0 = arith.constant 0 : index
    %c0_0 = arith.constant 0 : index
    %c0_1 = arith.constant 0 : index
    %c0_2 = arith.constant 0 : index
    %0 = vector.load %arg1[%c0, %c0_0, %c0_1, %c0_2] : memref<1x2x2x16xf32, #tpu.memory_space<vmem>>, vector<1x2x2x16xf32>
    %c0_3 = arith.constant 0 : index
    %c0_4 = arith.constant 0 : index
    %1 = vector.load %arg2[%c0_3, %c0_4] : memref<2x8xf32, #tpu.memory_space<vmem>>, vector<2x8xf32>
    %c0_5 = arith.constant 0 : index
    %c0_6 = arith.constant 0 : index
    %c0_7 = arith.constant 0 : index
    %c0_8 = arith.constant 0 : index
    %2 = vector.load %arg3[%c0_5, %c0_6, %c0_7, %c0_8] : memref<2x2x2x4xf32, #tpu.memory_space<vmem>>, vector<2x2x2x4xf32>
    %c0_9 = arith.constant 0 : index
    %c0_10 = arith.constant 0 : index
    %c0_11 = arith.constant 0 : index
    %c0_12 = arith.constant 0 : index
    %3 = vector.load %arg4[%c0_9, %c0_10, %c0_11, %c0_12] : memref<2x2x2x4xf32, #tpu.memory_space<vmem>>, vector<2x2x2x4xf32>
    %c0_13 = arith.constant 0 : index
    %c0_14 = arith.constant 0 : index
    %c0_15 = arith.constant 0 : index
    %4 = vector.load %arg5[%c0_13, %c0_14, %c0_15] : memref<9x16x16xbf16, #tpu.memory_space<vmem>>, vector<9x16x16xbf16>
    %c0_16 = arith.constant 0 : index
    %c0_17 = arith.constant 0 : index
    %5 = vector.load %arg6[%c0_16, %c0_17] : memref<1x16xf32, #tpu.memory_space<vmem>>, vector<1x16xf32>
    %c0_18 = arith.constant 0 : index
    %c0_19 = arith.constant 0 : index
    %c0_20 = arith.constant 0 : index
    %c0_21 = arith.constant 0 : index
    %6 = vector.load %arg7[%c0_18, %c0_19, %c0_20, %c0_21] : memref<1x2x2x16xf32, #tpu.memory_space<vmem>>, vector<1x2x2x16xf32>
    %c0_22 = arith.constant 0 : index
    %c0_23 = arith.constant 0 : index
    %c0_24 = arith.constant 0 : index
    %c0_25 = arith.constant 0 : index
    %7 = vector.load %arg8[%c0_22, %c0_23, %c0_24, %c0_25] : memref<1x2x2x16xf32, #tpu.memory_space<vmem>>, vector<1x2x2x16xf32>
    %c0_26 = arith.constant 0 : index
    %c0_27 = arith.constant 0 : index
    %8 = vector.load %arg9[%c0_26, %c0_27] : memref<8x64xbf16, #tpu.memory_space<vmem>>, vector<8x64xbf16>
    %c0_28 = arith.constant 0 : index
    %c0_29 = arith.constant 0 : index
    %9 = vector.load %arg10[%c0_28, %c0_29] : memref<1x64xf32, #tpu.memory_space<vmem>>, vector<1x64xf32>
    %c0_30 = arith.constant 0 : index
    %c0_31 = arith.constant 0 : index
    %c0_32 = arith.constant 0 : index
    %10 = vector.load %arg11[%c0_30, %c0_31, %c0_32] : memref<9x4x16xbf16, #tpu.memory_space<vmem>>, vector<9x4x16xbf16>
    %c0_33 = arith.constant 0 : index
    %c0_34 = arith.constant 0 : index
    %11 = vector.load %arg12[%c0_33, %c0_34] : memref<1x16xf32, #tpu.memory_space<vmem>>, vector<1x16xf32>
    %c0_35 = arith.constant 0 : index
    %c0_36 = arith.constant 0 : index
    %c0_37 = arith.constant 0 : index
    %12 = vector.load %arg13[%c0_35, %c0_36, %c0_37] : memref<9x4x16xbf16, #tpu.memory_space<vmem>>, vector<9x4x16xbf16>
    %c0_38 = arith.constant 0 : index
    %c0_39 = arith.constant 0 : index
    %13 = vector.load %arg14[%c0_38, %c0_39] : memref<1x16xf32, #tpu.memory_space<vmem>>, vector<1x16xf32>
    %14 = arith.truncf %1 : vector<2x8xf32> to vector<2x8xbf16>
    %cst = arith.constant dense<0.000000e+00> : vector<2x64xf32>
    %15 = tpu.matmul %14, %8, %cst {dimension_numbers = #tpu.dot_dimension_numbers<[1], [0], [0], [1], [0, 0, 1, 1], [], []>} : vector<2x8xbf16>, vector<8x64xbf16>, vector<2x64xf32> -> vector<2x64xf32>
    %16 = vector.broadcast %9 : vector<1x64xf32> to vector<2x64xf32>
    %17 = arith.addf %15, %16 : vector<2x64xf32>
    %cst_40 = arith.constant 0.000000e+00 : f32
    %18 = vector.broadcast %cst_40 : f32 to vector<2x1x2x4xf32>
    %19 = tpu.concatenate %18, %2, %18 in 1 : vector<2x1x2x4xf32>, vector<2x2x2x4xf32>, vector<2x1x2x4xf32> -> vector<2x4x2x4xf32>
    %cst_41 = arith.constant 0.000000e+00 : f32
    %20 = vector.broadcast %cst_41 : f32 to vector<2x4x1x4xf32>
    %21 = tpu.concatenate %20, %19, %20 in 2 : vector<2x4x1x4xf32>, vector<2x4x2x4xf32>, vector<2x4x1x4xf32> -> vector<2x4x4x4xf32>
    %22 = vector.extract_strided_slice %21 {offsets = [0, 0, 0, 0], sizes = [2, 2, 2, 4], strides = [1, 1, 1, 1]} : vector<2x4x4x4xf32> to vector<2x2x2x4xf32>
    %23 = vector.shape_cast %22 : vector<2x2x2x4xf32> to vector<8x4xf32>
    %24 = arith.truncf %23 : vector<8x4xf32> to vector<8x4xbf16>
    %25 = vector.extract_strided_slice %10 {offsets = [0, 0, 0], sizes = [1, 4, 16], strides = [1, 1, 1]} : vector<9x4x16xbf16> to vector<1x4x16xbf16>
    %26 = vector.shape_cast %25 : vector<1x4x16xbf16> to vector<4x16xbf16>
    %cst_42 = arith.constant dense<0.000000e+00> : vector<8x16xf32>
    %27 = tpu.matmul %24, %26, %cst_42 {dimension_numbers = #tpu.dot_dimension_numbers<[1], [0], [0], [1], [0, 0, 1, 1], [], []>} : vector<8x4xbf16>, vector<4x16xbf16>, vector<8x16xf32> -> vector<8x16xf32>
    %28 = vector.extract_strided_slice %21 {offsets = [0, 0, 1, 0], sizes = [2, 2, 2, 4], strides = [1, 1, 1, 1]} : vector<2x4x4x4xf32> to vector<2x2x2x4xf32>
    %29 = vector.shape_cast %28 : vector<2x2x2x4xf32> to vector<8x4xf32>
    %30 = arith.truncf %29 : vector<8x4xf32> to vector<8x4xbf16>
    %31 = vector.extract_strided_slice %10 {offsets = [1, 0, 0], sizes = [1, 4, 16], strides = [1, 1, 1]} : vector<9x4x16xbf16> to vector<1x4x16xbf16>
    %32 = vector.shape_cast %31 : vector<1x4x16xbf16> to vector<4x16xbf16>
    %cst_43 = arith.constant dense<0.000000e+00> : vector<8x16xf32>
    %33 = tpu.matmul %30, %32, %cst_43 {dimension_numbers = #tpu.dot_dimension_numbers<[1], [0], [0], [1], [0, 0, 1, 1], [], []>} : vector<8x4xbf16>, vector<4x16xbf16>, vector<8x16xf32> -> vector<8x16xf32>
    %34 = arith.addf %27, %33 : vector<8x16xf32>
    %35 = vector.extract_strided_slice %21 {offsets = [0, 0, 2, 0], sizes = [2, 2, 2, 4], strides = [1, 1, 1, 1]} : vector<2x4x4x4xf32> to vector<2x2x2x4xf32>
    %36 = vector.shape_cast %35 : vector<2x2x2x4xf32> to vector<8x4xf32>
    %37 = arith.truncf %36 : vector<8x4xf32> to vector<8x4xbf16>
    %38 = vector.extract_strided_slice %10 {offsets = [2, 0, 0], sizes = [1, 4, 16], strides = [1, 1, 1]} : vector<9x4x16xbf16> to vector<1x4x16xbf16>
    %39 = vector.shape_cast %38 : vector<1x4x16xbf16> to vector<4x16xbf16>
    %cst_44 = arith.constant dense<0.000000e+00> : vector<8x16xf32>
    %40 = tpu.matmul %37, %39, %cst_44 {dimension_numbers = #tpu.dot_dimension_numbers<[1], [0], [0], [1], [0, 0, 1, 1], [], []>} : vector<8x4xbf16>, vector<4x16xbf16>, vector<8x16xf32> -> vector<8x16xf32>
    %41 = arith.addf %34, %40 : vector<8x16xf32>
    %42 = vector.extract_strided_slice %21 {offsets = [0, 1, 0, 0], sizes = [2, 2, 2, 4], strides = [1, 1, 1, 1]} : vector<2x4x4x4xf32> to vector<2x2x2x4xf32>
    %43 = vector.shape_cast %42 : vector<2x2x2x4xf32> to vector<8x4xf32>
    %44 = arith.truncf %43 : vector<8x4xf32> to vector<8x4xbf16>
    %45 = vector.extract_strided_slice %10 {offsets = [3, 0, 0], sizes = [1, 4, 16], strides = [1, 1, 1]} : vector<9x4x16xbf16> to vector<1x4x16xbf16>
    %46 = vector.shape_cast %45 : vector<1x4x16xbf16> to vector<4x16xbf16>
    %cst_45 = arith.constant dense<0.000000e+00> : vector<8x16xf32>
    %47 = tpu.matmul %44, %46, %cst_45 {dimension_numbers = #tpu.dot_dimension_numbers<[1], [0], [0], [1], [0, 0, 1, 1], [], []>} : vector<8x4xbf16>, vector<4x16xbf16>, vector<8x16xf32> -> vector<8x16xf32>
    %48 = arith.addf %41, %47 : vector<8x16xf32>
    %49 = vector.extract_strided_slice %21 {offsets = [0, 1, 1, 0], sizes = [2, 2, 2, 4], strides = [1, 1, 1, 1]} : vector<2x4x4x4xf32> to vector<2x2x2x4xf32>
    %50 = vector.shape_cast %49 : vector<2x2x2x4xf32> to vector<8x4xf32>
    %51 = arith.truncf %50 : vector<8x4xf32> to vector<8x4xbf16>
    %52 = vector.extract_strided_slice %10 {offsets = [4, 0, 0], sizes = [1, 4, 16], strides = [1, 1, 1]} : vector<9x4x16xbf16> to vector<1x4x16xbf16>
    %53 = vector.shape_cast %52 : vector<1x4x16xbf16> to vector<4x16xbf16>
    %cst_46 = arith.constant dense<0.000000e+00> : vector<8x16xf32>
    %54 = tpu.matmul %51, %53, %cst_46 {dimension_numbers = #tpu.dot_dimension_numbers<[1], [0], [0], [1], [0, 0, 1, 1], [], []>} : vector<8x4xbf16>, vector<4x16xbf16>, vector<8x16xf32> -> vector<8x16xf32>
    %55 = arith.addf %48, %54 : vector<8x16xf32>
    %56 = vector.extract_strided_slice %21 {offsets = [0, 1, 2, 0], sizes = [2, 2, 2, 4], strides = [1, 1, 1, 1]} : vector<2x4x4x4xf32> to vector<2x2x2x4xf32>
    %57 = vector.shape_cast %56 : vector<2x2x2x4xf32> to vector<8x4xf32>
    %58 = arith.truncf %57 : vector<8x4xf32> to vector<8x4xbf16>
    %59 = vector.extract_strided_slice %10 {offsets = [5, 0, 0], sizes = [1, 4, 16], strides = [1, 1, 1]} : vector<9x4x16xbf16> to vector<1x4x16xbf16>
    %60 = vector.shape_cast %59 : vector<1x4x16xbf16> to vector<4x16xbf16>
    %cst_47 = arith.constant dense<0.000000e+00> : vector<8x16xf32>
    %61 = tpu.matmul %58, %60, %cst_47 {dimension_numbers = #tpu.dot_dimension_numbers<[1], [0], [0], [1], [0, 0, 1, 1], [], []>} : vector<8x4xbf16>, vector<4x16xbf16>, vector<8x16xf32> -> vector<8x16xf32>
    %62 = arith.addf %55, %61 : vector<8x16xf32>
    %63 = vector.extract_strided_slice %21 {offsets = [0, 2, 0, 0], sizes = [2, 2, 2, 4], strides = [1, 1, 1, 1]} : vector<2x4x4x4xf32> to vector<2x2x2x4xf32>
    %64 = vector.shape_cast %63 : vector<2x2x2x4xf32> to vector<8x4xf32>
    %65 = arith.truncf %64 : vector<8x4xf32> to vector<8x4xbf16>
    %66 = vector.extract_strided_slice %10 {offsets = [6, 0, 0], sizes = [1, 4, 16], strides = [1, 1, 1]} : vector<9x4x16xbf16> to vector<1x4x16xbf16>
    %67 = vector.shape_cast %66 : vector<1x4x16xbf16> to vector<4x16xbf16>
    %cst_48 = arith.constant dense<0.000000e+00> : vector<8x16xf32>
    %68 = tpu.matmul %65, %67, %cst_48 {dimension_numbers = #tpu.dot_dimension_numbers<[1], [0], [0], [1], [0, 0, 1, 1], [], []>} : vector<8x4xbf16>, vector<4x16xbf16>, vector<8x16xf32> -> vector<8x16xf32>
    %69 = arith.addf %62, %68 : vector<8x16xf32>
    %70 = vector.extract_strided_slice %21 {offsets = [0, 2, 1, 0], sizes = [2, 2, 2, 4], strides = [1, 1, 1, 1]} : vector<2x4x4x4xf32> to vector<2x2x2x4xf32>
    %71 = vector.shape_cast %70 : vector<2x2x2x4xf32> to vector<8x4xf32>
    %72 = arith.truncf %71 : vector<8x4xf32> to vector<8x4xbf16>
    %73 = vector.extract_strided_slice %10 {offsets = [7, 0, 0], sizes = [1, 4, 16], strides = [1, 1, 1]} : vector<9x4x16xbf16> to vector<1x4x16xbf16>
    %74 = vector.shape_cast %73 : vector<1x4x16xbf16> to vector<4x16xbf16>
    %cst_49 = arith.constant dense<0.000000e+00> : vector<8x16xf32>
    %75 = tpu.matmul %72, %74, %cst_49 {dimension_numbers = #tpu.dot_dimension_numbers<[1], [0], [0], [1], [0, 0, 1, 1], [], []>} : vector<8x4xbf16>, vector<4x16xbf16>, vector<8x16xf32> -> vector<8x16xf32>
    %76 = arith.addf %69, %75 : vector<8x16xf32>
    %77 = vector.extract_strided_slice %21 {offsets = [0, 2, 2, 0], sizes = [2, 2, 2, 4], strides = [1, 1, 1, 1]} : vector<2x4x4x4xf32> to vector<2x2x2x4xf32>
    %78 = vector.shape_cast %77 : vector<2x2x2x4xf32> to vector<8x4xf32>
    %79 = arith.truncf %78 : vector<8x4xf32> to vector<8x4xbf16>
    %80 = vector.extract_strided_slice %10 {offsets = [8, 0, 0], sizes = [1, 4, 16], strides = [1, 1, 1]} : vector<9x4x16xbf16> to vector<1x4x16xbf16>
    %81 = vector.shape_cast %80 : vector<1x4x16xbf16> to vector<4x16xbf16>
    %cst_50 = arith.constant dense<0.000000e+00> : vector<8x16xf32>
    %82 = tpu.matmul %79, %81, %cst_50 {dimension_numbers = #tpu.dot_dimension_numbers<[1], [0], [0], [1], [0, 0, 1, 1], [], []>} : vector<8x4xbf16>, vector<4x16xbf16>, vector<8x16xf32> -> vector<8x16xf32>
    %83 = arith.addf %76, %82 : vector<8x16xf32>
    %84 = vector.broadcast %11 : vector<1x16xf32> to vector<8x16xf32>
    %85 = arith.addf %83, %84 : vector<8x16xf32>
    %86 = vector.shape_cast %85 : vector<8x16xf32> to vector<2x2x2x16xf32>
    %87 = vector.broadcast %0 : vector<1x2x2x16xf32> to vector<2x2x2x16xf32>
    %88 = arith.addf %87, %86 : vector<2x2x2x16xf32>
    %89 = vector.extract_strided_slice %17 {offsets = [0, 0], sizes = [2, 16], strides = [1, 1]} : vector<2x64xf32> to vector<2x16xf32>
    %90 = vector.extract_strided_slice %17 {offsets = [0, 16], sizes = [2, 16], strides = [1, 1]} : vector<2x64xf32> to vector<2x16xf32>
    %cst_51 = arith.constant dense<0.000000e+00> : vector<2x2x16xf32>
    %91 = vector.multi_reduction <add>, %88, %cst_51 [2] : vector<2x2x2x16xf32> to vector<2x2x16xf32>
    %92 = vector.shape_cast %91 : vector<2x2x16xf32> to vector<2x2x1x16xf32>
    %cst_52 = arith.constant dense<0.000000e+00> : vector<2x1x16xf32>
    %93 = vector.multi_reduction <add>, %92, %cst_52 [1] : vector<2x2x1x16xf32> to vector<2x1x16xf32>
    %94 = vector.shape_cast %93 : vector<2x1x16xf32> to vector<2x1x1x16xf32>
    %cst_53 = arith.constant 4.000000e+00 : f32
    %95 = vector.broadcast %cst_53 : f32 to vector<2x1x1x16xf32>
    %96 = arith.divf %94, %95 : vector<2x1x1x16xf32>
    %97 = vector.broadcast %96 : vector<2x1x1x16xf32> to vector<2x2x2x16xf32>
    %98 = arith.subf %88, %97 : vector<2x2x2x16xf32>
    %99 = arith.mulf %98, %98 : vector<2x2x2x16xf32>
    %cst_54 = arith.constant dense<0.000000e+00> : vector<2x2x16xf32>
    %100 = vector.multi_reduction <add>, %99, %cst_54 [2] : vector<2x2x2x16xf32> to vector<2x2x16xf32>
    %101 = vector.shape_cast %100 : vector<2x2x16xf32> to vector<2x2x1x16xf32>
    %cst_55 = arith.constant dense<0.000000e+00> : vector<2x1x16xf32>
    %102 = vector.multi_reduction <add>, %101, %cst_55 [1] : vector<2x2x1x16xf32> to vector<2x1x16xf32>
    %103 = vector.shape_cast %102 : vector<2x1x16xf32> to vector<2x1x1x16xf32>
    %cst_56 = arith.constant 3.000000e+00 : f32
    %104 = vector.broadcast %cst_56 : f32 to vector<2x1x1x16xf32>
    %105 = arith.divf %103, %104 : vector<2x1x1x16xf32>
    %106 = math.sqrt %105 : vector<2x1x1x16xf32>
    %cst_57 = arith.constant 9.99999971E-10 : f32
    %107 = vector.broadcast %cst_57 : f32 to vector<2x1x1x16xf32>
    %108 = arith.addf %106, %107 : vector<2x1x1x16xf32>
    %109 = vector.broadcast %108 : vector<2x1x1x16xf32> to vector<2x2x2x16xf32>
    %110 = arith.divf %98, %109 : vector<2x2x2x16xf32>
    %111 = vector.shape_cast %89 : vector<2x16xf32> to vector<2x1x1x16xf32>
    %112 = vector.broadcast %111 : vector<2x1x1x16xf32> to vector<2x2x2x16xf32>
    %113 = arith.mulf %110, %112 : vector<2x2x2x16xf32>
    %114 = vector.shape_cast %90 : vector<2x16xf32> to vector<2x1x1x16xf32>
    %115 = vector.broadcast %114 : vector<2x1x1x16xf32> to vector<2x2x2x16xf32>
    %116 = arith.addf %113, %115 : vector<2x2x2x16xf32>
    %cst_58 = arith.constant 0.000000e+00 : f32
    %117 = vector.broadcast %cst_58 : f32 to vector<2x1x2x16xf32>
    %118 = tpu.concatenate %117, %116, %117 in 1 : vector<2x1x2x16xf32>, vector<2x2x2x16xf32>, vector<2x1x2x16xf32> -> vector<2x4x2x16xf32>
    %cst_59 = arith.constant 0.000000e+00 : f32
    %119 = vector.broadcast %cst_59 : f32 to vector<2x4x1x16xf32>
    %120 = tpu.concatenate %119, %118, %119 in 2 : vector<2x4x1x16xf32>, vector<2x4x2x16xf32>, vector<2x4x1x16xf32> -> vector<2x4x4x16xf32>
    %121 = vector.extract_strided_slice %120 {offsets = [0, 0, 0, 0], sizes = [2, 2, 2, 16], strides = [1, 1, 1, 1]} : vector<2x4x4x16xf32> to vector<2x2x2x16xf32>
    %122 = vector.shape_cast %121 : vector<2x2x2x16xf32> to vector<8x16xf32>
    %123 = arith.truncf %122 : vector<8x16xf32> to vector<8x16xbf16>
    %124 = vector.extract_strided_slice %4 {offsets = [0, 0, 0], sizes = [1, 16, 16], strides = [1, 1, 1]} : vector<9x16x16xbf16> to vector<1x16x16xbf16>
    %125 = vector.shape_cast %124 : vector<1x16x16xbf16> to vector<16x16xbf16>
    %cst_60 = arith.constant dense<0.000000e+00> : vector<8x16xf32>
    %126 = tpu.matmul %123, %125, %cst_60 {dimension_numbers = #tpu.dot_dimension_numbers<[1], [0], [0], [1], [0, 0, 1, 1], [], []>} : vector<8x16xbf16>, vector<16x16xbf16>, vector<8x16xf32> -> vector<8x16xf32>
    %127 = vector.extract_strided_slice %120 {offsets = [0, 0, 1, 0], sizes = [2, 2, 2, 16], strides = [1, 1, 1, 1]} : vector<2x4x4x16xf32> to vector<2x2x2x16xf32>
    %128 = vector.shape_cast %127 : vector<2x2x2x16xf32> to vector<8x16xf32>
    %129 = arith.truncf %128 : vector<8x16xf32> to vector<8x16xbf16>
    %130 = vector.extract_strided_slice %4 {offsets = [1, 0, 0], sizes = [1, 16, 16], strides = [1, 1, 1]} : vector<9x16x16xbf16> to vector<1x16x16xbf16>
    %131 = vector.shape_cast %130 : vector<1x16x16xbf16> to vector<16x16xbf16>
    %cst_61 = arith.constant dense<0.000000e+00> : vector<8x16xf32>
    %132 = tpu.matmul %129, %131, %cst_61 {dimension_numbers = #tpu.dot_dimension_numbers<[1], [0], [0], [1], [0, 0, 1, 1], [], []>} : vector<8x16xbf16>, vector<16x16xbf16>, vector<8x16xf32> -> vector<8x16xf32>
    %133 = arith.addf %126, %132 : vector<8x16xf32>
    %134 = vector.extract_strided_slice %120 {offsets = [0, 0, 2, 0], sizes = [2, 2, 2, 16], strides = [1, 1, 1, 1]} : vector<2x4x4x16xf32> to vector<2x2x2x16xf32>
    %135 = vector.shape_cast %134 : vector<2x2x2x16xf32> to vector<8x16xf32>
    %136 = arith.truncf %135 : vector<8x16xf32> to vector<8x16xbf16>
    %137 = vector.extract_strided_slice %4 {offsets = [2, 0, 0], sizes = [1, 16, 16], strides = [1, 1, 1]} : vector<9x16x16xbf16> to vector<1x16x16xbf16>
    %138 = vector.shape_cast %137 : vector<1x16x16xbf16> to vector<16x16xbf16>
    %cst_62 = arith.constant dense<0.000000e+00> : vector<8x16xf32>
    %139 = tpu.matmul %136, %138, %cst_62 {dimension_numbers = #tpu.dot_dimension_numbers<[1], [0], [0], [1], [0, 0, 1, 1], [], []>} : vector<8x16xbf16>, vector<16x16xbf16>, vector<8x16xf32> -> vector<8x16xf32>
    %140 = arith.addf %133, %139 : vector<8x16xf32>
    %141 = vector.extract_strided_slice %120 {offsets = [0, 1, 0, 0], sizes = [2, 2, 2, 16], strides = [1, 1, 1, 1]} : vector<2x4x4x16xf32> to vector<2x2x2x16xf32>
    %142 = vector.shape_cast %141 : vector<2x2x2x16xf32> to vector<8x16xf32>
    %143 = arith.truncf %142 : vector<8x16xf32> to vector<8x16xbf16>
    %144 = vector.extract_strided_slice %4 {offsets = [3, 0, 0], sizes = [1, 16, 16], strides = [1, 1, 1]} : vector<9x16x16xbf16> to vector<1x16x16xbf16>
    %145 = vector.shape_cast %144 : vector<1x16x16xbf16> to vector<16x16xbf16>
    %cst_63 = arith.constant dense<0.000000e+00> : vector<8x16xf32>
    %146 = tpu.matmul %143, %145, %cst_63 {dimension_numbers = #tpu.dot_dimension_numbers<[1], [0], [0], [1], [0, 0, 1, 1], [], []>} : vector<8x16xbf16>, vector<16x16xbf16>, vector<8x16xf32> -> vector<8x16xf32>
    %147 = arith.addf %140, %146 : vector<8x16xf32>
    %148 = vector.extract_strided_slice %120 {offsets = [0, 1, 1, 0], sizes = [2, 2, 2, 16], strides = [1, 1, 1, 1]} : vector<2x4x4x16xf32> to vector<2x2x2x16xf32>
    %149 = vector.shape_cast %148 : vector<2x2x2x16xf32> to vector<8x16xf32>
    %150 = arith.truncf %149 : vector<8x16xf32> to vector<8x16xbf16>
    %151 = vector.extract_strided_slice %4 {offsets = [4, 0, 0], sizes = [1, 16, 16], strides = [1, 1, 1]} : vector<9x16x16xbf16> to vector<1x16x16xbf16>
    %152 = vector.shape_cast %151 : vector<1x16x16xbf16> to vector<16x16xbf16>
    %cst_64 = arith.constant dense<0.000000e+00> : vector<8x16xf32>
    %153 = tpu.matmul %150, %152, %cst_64 {dimension_numbers = #tpu.dot_dimension_numbers<[1], [0], [0], [1], [0, 0, 1, 1], [], []>} : vector<8x16xbf16>, vector<16x16xbf16>, vector<8x16xf32> -> vector<8x16xf32>
    %154 = arith.addf %147, %153 : vector<8x16xf32>
    %155 = vector.extract_strided_slice %120 {offsets = [0, 1, 2, 0], sizes = [2, 2, 2, 16], strides = [1, 1, 1, 1]} : vector<2x4x4x16xf32> to vector<2x2x2x16xf32>
    %156 = vector.shape_cast %155 : vector<2x2x2x16xf32> to vector<8x16xf32>
    %157 = arith.truncf %156 : vector<8x16xf32> to vector<8x16xbf16>
    %158 = vector.extract_strided_slice %4 {offsets = [5, 0, 0], sizes = [1, 16, 16], strides = [1, 1, 1]} : vector<9x16x16xbf16> to vector<1x16x16xbf16>
    %159 = vector.shape_cast %158 : vector<1x16x16xbf16> to vector<16x16xbf16>
    %cst_65 = arith.constant dense<0.000000e+00> : vector<8x16xf32>
    %160 = tpu.matmul %157, %159, %cst_65 {dimension_numbers = #tpu.dot_dimension_numbers<[1], [0], [0], [1], [0, 0, 1, 1], [], []>} : vector<8x16xbf16>, vector<16x16xbf16>, vector<8x16xf32> -> vector<8x16xf32>
    %161 = arith.addf %154, %160 : vector<8x16xf32>
    %162 = vector.extract_strided_slice %120 {offsets = [0, 2, 0, 0], sizes = [2, 2, 2, 16], strides = [1, 1, 1, 1]} : vector<2x4x4x16xf32> to vector<2x2x2x16xf32>
    %163 = vector.shape_cast %162 : vector<2x2x2x16xf32> to vector<8x16xf32>
    %164 = arith.truncf %163 : vector<8x16xf32> to vector<8x16xbf16>
    %165 = vector.extract_strided_slice %4 {offsets = [6, 0, 0], sizes = [1, 16, 16], strides = [1, 1, 1]} : vector<9x16x16xbf16> to vector<1x16x16xbf16>
    %166 = vector.shape_cast %165 : vector<1x16x16xbf16> to vector<16x16xbf16>
    %cst_66 = arith.constant dense<0.000000e+00> : vector<8x16xf32>
    %167 = tpu.matmul %164, %166, %cst_66 {dimension_numbers = #tpu.dot_dimension_numbers<[1], [0], [0], [1], [0, 0, 1, 1], [], []>} : vector<8x16xbf16>, vector<16x16xbf16>, vector<8x16xf32> -> vector<8x16xf32>
    %168 = arith.addf %161, %167 : vector<8x16xf32>
    %169 = vector.extract_strided_slice %120 {offsets = [0, 2, 1, 0], sizes = [2, 2, 2, 16], strides = [1, 1, 1, 1]} : vector<2x4x4x16xf32> to vector<2x2x2x16xf32>
    %170 = vector.shape_cast %169 : vector<2x2x2x16xf32> to vector<8x16xf32>
    %171 = arith.truncf %170 : vector<8x16xf32> to vector<8x16xbf16>
    %172 = vector.extract_strided_slice %4 {offsets = [7, 0, 0], sizes = [1, 16, 16], strides = [1, 1, 1]} : vector<9x16x16xbf16> to vector<1x16x16xbf16>
    %173 = vector.shape_cast %172 : vector<1x16x16xbf16> to vector<16x16xbf16>
    %cst_67 = arith.constant dense<0.000000e+00> : vector<8x16xf32>
    %174 = tpu.matmul %171, %173, %cst_67 {dimension_numbers = #tpu.dot_dimension_numbers<[1], [0], [0], [1], [0, 0, 1, 1], [], []>} : vector<8x16xbf16>, vector<16x16xbf16>, vector<8x16xf32> -> vector<8x16xf32>
    %175 = arith.addf %168, %174 : vector<8x16xf32>
    %176 = vector.extract_strided_slice %120 {offsets = [0, 2, 2, 0], sizes = [2, 2, 2, 16], strides = [1, 1, 1, 1]} : vector<2x4x4x16xf32> to vector<2x2x2x16xf32>
    %177 = vector.shape_cast %176 : vector<2x2x2x16xf32> to vector<8x16xf32>
    %178 = arith.truncf %177 : vector<8x16xf32> to vector<8x16xbf16>
    %179 = vector.extract_strided_slice %4 {offsets = [8, 0, 0], sizes = [1, 16, 16], strides = [1, 1, 1]} : vector<9x16x16xbf16> to vector<1x16x16xbf16>
    %180 = vector.shape_cast %179 : vector<1x16x16xbf16> to vector<16x16xbf16>
    %cst_68 = arith.constant dense<0.000000e+00> : vector<8x16xf32>
    %181 = tpu.matmul %178, %180, %cst_68 {dimension_numbers = #tpu.dot_dimension_numbers<[1], [0], [0], [1], [0, 0, 1, 1], [], []>} : vector<8x16xbf16>, vector<16x16xbf16>, vector<8x16xf32> -> vector<8x16xf32>
    %182 = arith.addf %175, %181 : vector<8x16xf32>
    %183 = vector.broadcast %5 : vector<1x16xf32> to vector<8x16xf32>
    %184 = arith.addf %182, %183 : vector<8x16xf32>
    %185 = vector.shape_cast %184 : vector<8x16xf32> to vector<2x2x2x16xf32>
    %cst_69 = arith.constant dense<0.000000e+00> : vector<2x2x2xf32>
    %186 = vector.multi_reduction <add>, %185, %cst_69 [3] : vector<2x2x2x16xf32> to vector<2x2x2xf32>
    %187 = vector.shape_cast %186 : vector<2x2x2xf32> to vector<2x2x2x1xf32>
    %cst_70 = arith.constant dense<0.000000e+00> : vector<2x2x1xf32>
    %188 = vector.multi_reduction <add>, %187, %cst_70 [2] : vector<2x2x2x1xf32> to vector<2x2x1xf32>
    %189 = vector.shape_cast %188 : vector<2x2x1xf32> to vector<2x2x1x1xf32>
    %cst_71 = arith.constant dense<0.000000e+00> : vector<2x1x1xf32>
    %190 = vector.multi_reduction <add>, %189, %cst_71 [1] : vector<2x2x1x1xf32> to vector<2x1x1xf32>
    %191 = vector.shape_cast %190 : vector<2x1x1xf32> to vector<2x1x1x1xf32>
    %cst_72 = arith.constant 6.400000e+01 : f32
    %192 = vector.broadcast %cst_72 : f32 to vector<2x1x1x1xf32>
    %193 = arith.divf %191, %192 : vector<2x1x1x1xf32>
    %194 = vector.broadcast %193 : vector<2x1x1x1xf32> to vector<2x2x2x16xf32>
    %195 = arith.subf %185, %194 : vector<2x2x2x16xf32>
    %196 = arith.mulf %195, %195 : vector<2x2x2x16xf32>
    %cst_73 = arith.constant dense<0.000000e+00> : vector<2x2x2xf32>
    %197 = vector.multi_reduction <add>, %196, %cst_73 [3] : vector<2x2x2x16xf32> to vector<2x2x2xf32>
    %198 = vector.shape_cast %197 : vector<2x2x2xf32> to vector<2x2x2x1xf32>
    %cst_74 = arith.constant dense<0.000000e+00> : vector<2x2x1xf32>
    %199 = vector.multi_reduction <add>, %198, %cst_74 [2] : vector<2x2x2x1xf32> to vector<2x2x1xf32>
    %200 = vector.shape_cast %199 : vector<2x2x1xf32> to vector<2x2x1x1xf32>
    %cst_75 = arith.constant dense<0.000000e+00> : vector<2x1x1xf32>
    %201 = vector.multi_reduction <add>, %200, %cst_75 [1] : vector<2x2x1x1xf32> to vector<2x1x1xf32>
    %202 = vector.shape_cast %201 : vector<2x1x1xf32> to vector<2x1x1x1xf32>
    %cst_76 = arith.constant 6.400000e+01 : f32
    %203 = vector.broadcast %cst_76 : f32 to vector<2x1x1x1xf32>
    %204 = arith.divf %202, %203 : vector<2x1x1x1xf32>
    %cst_77 = arith.constant 9.99999974E-6 : f32
    %205 = vector.broadcast %cst_77 : f32 to vector<2x1x1x1xf32>
    %206 = arith.addf %204, %205 : vector<2x1x1x1xf32>
    %207 = math.rsqrt %206 : vector<2x1x1x1xf32>
    %208 = vector.broadcast %207 : vector<2x1x1x1xf32> to vector<2x2x2x16xf32>
    %209 = arith.mulf %195, %208 : vector<2x2x2x16xf32>
    %210 = vector.broadcast %6 : vector<1x2x2x16xf32> to vector<2x2x2x16xf32>
    %211 = arith.mulf %209, %210 : vector<2x2x2x16xf32>
    %212 = vector.broadcast %7 : vector<1x2x2x16xf32> to vector<2x2x2x16xf32>
    %213 = arith.addf %211, %212 : vector<2x2x2x16xf32>
    %cst_78 = arith.constant 0.00999999977 : f32
    %214 = vector.broadcast %cst_78 : f32 to vector<2x2x2x16xf32>
    %215 = arith.mulf %214, %213 : vector<2x2x2x16xf32>
    %216 = arith.maximumf %213, %215 : vector<2x2x2x16xf32>
    %217 = arith.addf %116, %216 : vector<2x2x2x16xf32>
    %cst_79 = arith.constant 0.000000e+00 : f32
    %218 = vector.broadcast %cst_79 : f32 to vector<2x1x2x4xf32>
    %219 = tpu.concatenate %218, %3, %218 in 1 : vector<2x1x2x4xf32>, vector<2x2x2x4xf32>, vector<2x1x2x4xf32> -> vector<2x4x2x4xf32>
    %cst_80 = arith.constant 0.000000e+00 : f32
    %220 = vector.broadcast %cst_80 : f32 to vector<2x4x1x4xf32>
    %221 = tpu.concatenate %220, %219, %220 in 2 : vector<2x4x1x4xf32>, vector<2x4x2x4xf32>, vector<2x4x1x4xf32> -> vector<2x4x4x4xf32>
    %222 = vector.extract_strided_slice %221 {offsets = [0, 0, 0, 0], sizes = [2, 2, 2, 4], strides = [1, 1, 1, 1]} : vector<2x4x4x4xf32> to vector<2x2x2x4xf32>
    %223 = vector.shape_cast %222 : vector<2x2x2x4xf32> to vector<8x4xf32>
    %224 = arith.truncf %223 : vector<8x4xf32> to vector<8x4xbf16>
    %225 = vector.extract_strided_slice %12 {offsets = [0, 0, 0], sizes = [1, 4, 16], strides = [1, 1, 1]} : vector<9x4x16xbf16> to vector<1x4x16xbf16>
    %226 = vector.shape_cast %225 : vector<1x4x16xbf16> to vector<4x16xbf16>
    %cst_81 = arith.constant dense<0.000000e+00> : vector<8x16xf32>
    %227 = tpu.matmul %224, %226, %cst_81 {dimension_numbers = #tpu.dot_dimension_numbers<[1], [0], [0], [1], [0, 0, 1, 1], [], []>} : vector<8x4xbf16>, vector<4x16xbf16>, vector<8x16xf32> -> vector<8x16xf32>
    %228 = vector.extract_strided_slice %221 {offsets = [0, 0, 1, 0], sizes = [2, 2, 2, 4], strides = [1, 1, 1, 1]} : vector<2x4x4x4xf32> to vector<2x2x2x4xf32>
    %229 = vector.shape_cast %228 : vector<2x2x2x4xf32> to vector<8x4xf32>
    %230 = arith.truncf %229 : vector<8x4xf32> to vector<8x4xbf16>
    %231 = vector.extract_strided_slice %12 {offsets = [1, 0, 0], sizes = [1, 4, 16], strides = [1, 1, 1]} : vector<9x4x16xbf16> to vector<1x4x16xbf16>
    %232 = vector.shape_cast %231 : vector<1x4x16xbf16> to vector<4x16xbf16>
    %cst_82 = arith.constant dense<0.000000e+00> : vector<8x16xf32>
    %233 = tpu.matmul %230, %232, %cst_82 {dimension_numbers = #tpu.dot_dimension_numbers<[1], [0], [0], [1], [0, 0, 1, 1], [], []>} : vector<8x4xbf16>, vector<4x16xbf16>, vector<8x16xf32> -> vector<8x16xf32>
    %234 = arith.addf %227, %233 : vector<8x16xf32>
    %235 = vector.extract_strided_slice %221 {offsets = [0, 0, 2, 0], sizes = [2, 2, 2, 4], strides = [1, 1, 1, 1]} : vector<2x4x4x4xf32> to vector<2x2x2x4xf32>
    %236 = vector.shape_cast %235 : vector<2x2x2x4xf32> to vector<8x4xf32>
    %237 = arith.truncf %236 : vector<8x4xf32> to vector<8x4xbf16>
    %238 = vector.extract_strided_slice %12 {offsets = [2, 0, 0], sizes = [1, 4, 16], strides = [1, 1, 1]} : vector<9x4x16xbf16> to vector<1x4x16xbf16>
    %239 = vector.shape_cast %238 : vector<1x4x16xbf16> to vector<4x16xbf16>
    %cst_83 = arith.constant dense<0.000000e+00> : vector<8x16xf32>
    %240 = tpu.matmul %237, %239, %cst_83 {dimension_numbers = #tpu.dot_dimension_numbers<[1], [0], [0], [1], [0, 0, 1, 1], [], []>} : vector<8x4xbf16>, vector<4x16xbf16>, vector<8x16xf32> -> vector<8x16xf32>
    %241 = arith.addf %234, %240 : vector<8x16xf32>
    %242 = vector.extract_strided_slice %221 {offsets = [0, 1, 0, 0], sizes = [2, 2, 2, 4], strides = [1, 1, 1, 1]} : vector<2x4x4x4xf32> to vector<2x2x2x4xf32>
    %243 = vector.shape_cast %242 : vector<2x2x2x4xf32> to vector<8x4xf32>
    %244 = arith.truncf %243 : vector<8x4xf32> to vector<8x4xbf16>
    %245 = vector.extract_strided_slice %12 {offsets = [3, 0, 0], sizes = [1, 4, 16], strides = [1, 1, 1]} : vector<9x4x16xbf16> to vector<1x4x16xbf16>
    %246 = vector.shape_cast %245 : vector<1x4x16xbf16> to vector<4x16xbf16>
    %cst_84 = arith.constant dense<0.000000e+00> : vector<8x16xf32>
    %247 = tpu.matmul %244, %246, %cst_84 {dimension_numbers = #tpu.dot_dimension_numbers<[1], [0], [0], [1], [0, 0, 1, 1], [], []>} : vector<8x4xbf16>, vector<4x16xbf16>, vector<8x16xf32> -> vector<8x16xf32>
    %248 = arith.addf %241, %247 : vector<8x16xf32>
    %249 = vector.extract_strided_slice %221 {offsets = [0, 1, 1, 0], sizes = [2, 2, 2, 4], strides = [1, 1, 1, 1]} : vector<2x4x4x4xf32> to vector<2x2x2x4xf32>
    %250 = vector.shape_cast %249 : vector<2x2x2x4xf32> to vector<8x4xf32>
    %251 = arith.truncf %250 : vector<8x4xf32> to vector<8x4xbf16>
    %252 = vector.extract_strided_slice %12 {offsets = [4, 0, 0], sizes = [1, 4, 16], strides = [1, 1, 1]} : vector<9x4x16xbf16> to vector<1x4x16xbf16>
    %253 = vector.shape_cast %252 : vector<1x4x16xbf16> to vector<4x16xbf16>
    %cst_85 = arith.constant dense<0.000000e+00> : vector<8x16xf32>
    %254 = tpu.matmul %251, %253, %cst_85 {dimension_numbers = #tpu.dot_dimension_numbers<[1], [0], [0], [1], [0, 0, 1, 1], [], []>} : vector<8x4xbf16>, vector<4x16xbf16>, vector<8x16xf32> -> vector<8x16xf32>
    %255 = arith.addf %248, %254 : vector<8x16xf32>
    %256 = vector.extract_strided_slice %221 {offsets = [0, 1, 2, 0], sizes = [2, 2, 2, 4], strides = [1, 1, 1, 1]} : vector<2x4x4x4xf32> to vector<2x2x2x4xf32>
    %257 = vector.shape_cast %256 : vector<2x2x2x4xf32> to vector<8x4xf32>
    %258 = arith.truncf %257 : vector<8x4xf32> to vector<8x4xbf16>
    %259 = vector.extract_strided_slice %12 {offsets = [5, 0, 0], sizes = [1, 4, 16], strides = [1, 1, 1]} : vector<9x4x16xbf16> to vector<1x4x16xbf16>
    %260 = vector.shape_cast %259 : vector<1x4x16xbf16> to vector<4x16xbf16>
    %cst_86 = arith.constant dense<0.000000e+00> : vector<8x16xf32>
    %261 = tpu.matmul %258, %260, %cst_86 {dimension_numbers = #tpu.dot_dimension_numbers<[1], [0], [0], [1], [0, 0, 1, 1], [], []>} : vector<8x4xbf16>, vector<4x16xbf16>, vector<8x16xf32> -> vector<8x16xf32>
    %262 = arith.addf %255, %261 : vector<8x16xf32>
    %263 = vector.extract_strided_slice %221 {offsets = [0, 2, 0, 0], sizes = [2, 2, 2, 4], strides = [1, 1, 1, 1]} : vector<2x4x4x4xf32> to vector<2x2x2x4xf32>
    %264 = vector.shape_cast %263 : vector<2x2x2x4xf32> to vector<8x4xf32>
    %265 = arith.truncf %264 : vector<8x4xf32> to vector<8x4xbf16>
    %266 = vector.extract_strided_slice %12 {offsets = [6, 0, 0], sizes = [1, 4, 16], strides = [1, 1, 1]} : vector<9x4x16xbf16> to vector<1x4x16xbf16>
    %267 = vector.shape_cast %266 : vector<1x4x16xbf16> to vector<4x16xbf16>
    %cst_87 = arith.constant dense<0.000000e+00> : vector<8x16xf32>
    %268 = tpu.matmul %265, %267, %cst_87 {dimension_numbers = #tpu.dot_dimension_numbers<[1], [0], [0], [1], [0, 0, 1, 1], [], []>} : vector<8x4xbf16>, vector<4x16xbf16>, vector<8x16xf32> -> vector<8x16xf32>
    %269 = arith.addf %262, %268 : vector<8x16xf32>
    %270 = vector.extract_strided_slice %221 {offsets = [0, 2, 1, 0], sizes = [2, 2, 2, 4], strides = [1, 1, 1, 1]} : vector<2x4x4x4xf32> to vector<2x2x2x4xf32>
    %271 = vector.shape_cast %270 : vector<2x2x2x4xf32> to vector<8x4xf32>
    %272 = arith.truncf %271 : vector<8x4xf32> to vector<8x4xbf16>
    %273 = vector.extract_strided_slice %12 {offsets = [7, 0, 0], sizes = [1, 4, 16], strides = [1, 1, 1]} : vector<9x4x16xbf16> to vector<1x4x16xbf16>
    %274 = vector.shape_cast %273 : vector<1x4x16xbf16> to vector<4x16xbf16>
    %cst_88 = arith.constant dense<0.000000e+00> : vector<8x16xf32>
    %275 = tpu.matmul %272, %274, %cst_88 {dimension_numbers = #tpu.dot_dimension_numbers<[1], [0], [0], [1], [0, 0, 1, 1], [], []>} : vector<8x4xbf16>, vector<4x16xbf16>, vector<8x16xf32> -> vector<8x16xf32>
    %276 = arith.addf %269, %275 : vector<8x16xf32>
    %277 = vector.extract_strided_slice %221 {offsets = [0, 2, 2, 0], sizes = [2, 2, 2, 4], strides = [1, 1, 1, 1]} : vector<2x4x4x4xf32> to vector<2x2x2x4xf32>
    %278 = vector.shape_cast %277 : vector<2x2x2x4xf32> to vector<8x4xf32>
    %279 = arith.truncf %278 : vector<8x4xf32> to vector<8x4xbf16>
    %280 = vector.extract_strided_slice %12 {offsets = [8, 0, 0], sizes = [1, 4, 16], strides = [1, 1, 1]} : vector<9x4x16xbf16> to vector<1x4x16xbf16>
    %281 = vector.shape_cast %280 : vector<1x4x16xbf16> to vector<4x16xbf16>
    %cst_89 = arith.constant dense<0.000000e+00> : vector<8x16xf32>
    %282 = tpu.matmul %279, %281, %cst_89 {dimension_numbers = #tpu.dot_dimension_numbers<[1], [0], [0], [1], [0, 0, 1, 1], [], []>} : vector<8x4xbf16>, vector<4x16xbf16>, vector<8x16xf32> -> vector<8x16xf32>
    %283 = arith.addf %276, %282 : vector<8x16xf32>
    %284 = vector.broadcast %13 : vector<1x16xf32> to vector<8x16xf32>
    %285 = arith.addf %283, %284 : vector<8x16xf32>
    %286 = vector.shape_cast %285 : vector<8x16xf32> to vector<2x2x2x16xf32>
    %287 = arith.addf %217, %286 : vector<2x2x2x16xf32>
    %288 = vector.extract_strided_slice %17 {offsets = [0, 32], sizes = [2, 16], strides = [1, 1]} : vector<2x64xf32> to vector<2x16xf32>
    %289 = vector.extract_strided_slice %17 {offsets = [0, 48], sizes = [2, 16], strides = [1, 1]} : vector<2x64xf32> to vector<2x16xf32>
    %cst_90 = arith.constant dense<0.000000e+00> : vector<2x2x16xf32>
    %290 = vector.multi_reduction <add>, %287, %cst_90 [2] : vector<2x2x2x16xf32> to vector<2x2x16xf32>
    %291 = vector.shape_cast %290 : vector<2x2x16xf32> to vector<2x2x1x16xf32>
    %cst_91 = arith.constant dense<0.000000e+00> : vector<2x1x16xf32>
    %292 = vector.multi_reduction <add>, %291, %cst_91 [1] : vector<2x2x1x16xf32> to vector<2x1x16xf32>
    %293 = vector.shape_cast %292 : vector<2x1x16xf32> to vector<2x1x1x16xf32>
    %cst_92 = arith.constant 4.000000e+00 : f32
    %294 = vector.broadcast %cst_92 : f32 to vector<2x1x1x16xf32>
    %295 = arith.divf %293, %294 : vector<2x1x1x16xf32>
    %296 = vector.broadcast %295 : vector<2x1x1x16xf32> to vector<2x2x2x16xf32>
    %297 = arith.subf %287, %296 : vector<2x2x2x16xf32>
    %298 = arith.mulf %297, %297 : vector<2x2x2x16xf32>
    %cst_93 = arith.constant dense<0.000000e+00> : vector<2x2x16xf32>
    %299 = vector.multi_reduction <add>, %298, %cst_93 [2] : vector<2x2x2x16xf32> to vector<2x2x16xf32>
    %300 = vector.shape_cast %299 : vector<2x2x16xf32> to vector<2x2x1x16xf32>
    %cst_94 = arith.constant dense<0.000000e+00> : vector<2x1x16xf32>
    %301 = vector.multi_reduction <add>, %300, %cst_94 [1] : vector<2x2x1x16xf32> to vector<2x1x16xf32>
    %302 = vector.shape_cast %301 : vector<2x1x16xf32> to vector<2x1x1x16xf32>
    %cst_95 = arith.constant 3.000000e+00 : f32
    %303 = vector.broadcast %cst_95 : f32 to vector<2x1x1x16xf32>
    %304 = arith.divf %302, %303 : vector<2x1x1x16xf32>
    %305 = math.sqrt %304 : vector<2x1x1x16xf32>
    %cst_96 = arith.constant 9.99999971E-10 : f32
    %306 = vector.broadcast %cst_96 : f32 to vector<2x1x1x16xf32>
    %307 = arith.addf %305, %306 : vector<2x1x1x16xf32>
    %308 = vector.broadcast %307 : vector<2x1x1x16xf32> to vector<2x2x2x16xf32>
    %309 = arith.divf %297, %308 : vector<2x2x2x16xf32>
    %310 = vector.shape_cast %288 : vector<2x16xf32> to vector<2x1x1x16xf32>
    %311 = vector.broadcast %310 : vector<2x1x1x16xf32> to vector<2x2x2x16xf32>
    %312 = arith.mulf %309, %311 : vector<2x2x2x16xf32>
    %313 = vector.shape_cast %289 : vector<2x16xf32> to vector<2x1x1x16xf32>
    %314 = vector.broadcast %313 : vector<2x1x1x16xf32> to vector<2x2x2x16xf32>
    %315 = arith.addf %312, %314 : vector<2x2x2x16xf32>
    %c0_97 = arith.constant 0 : index
    %c0_98 = arith.constant 0 : index
    %c0_99 = arith.constant 0 : index
    %c0_100 = arith.constant 0 : index
    %316 = vector.load %arg15[%c0_97, %c0_98, %c0_99, %c0_100] : memref<2x2x2x16xf32, #tpu.memory_space<vmem>>, vector<2x2x2x16xf32>
    tpu.vector_store %arg15[%c0_97, %c0_98, %c0_99, %c0_100], %315 {strides = array<i32>} : memref<2x2x2x16xf32, #tpu.memory_space<vmem>>, vector<2x2x2x16xf32>,
    return
  }
  func.func @transform_0(%arg0: i32) -> (i32, i32, i32, i32) {
    %c0_i32 = arith.constant 0 : i32
    %c0_i32_0 = arith.constant 0 : i32
    %c0_i32_1 = arith.constant 0 : i32
    %c0_i32_2 = arith.constant 0 : i32
    %c0_i32_3 = arith.constant 0 : i32
    return %c0_i32, %c0_i32_0, %c0_i32_1, %c0_i32_2 : i32, i32, i32, i32
  }
  func.func @transform_1(%arg0: i32) -> (i32, i32) {
    %c0_i32 = arith.constant 0 : i32
    %c0_i32_0 = arith.constant 0 : i32
    %c0_i32_1 = arith.constant 0 : i32
    return %c0_i32, %c0_i32_0 : i32, i32
  }
  func.func @transform_2(%arg0: i32) -> (i32, i32, i32, i32) {
    %c0_i32 = arith.constant 0 : i32
    %c0_i32_0 = arith.constant 0 : i32
    %c0_i32_1 = arith.constant 0 : i32
    %c0_i32_2 = arith.constant 0 : i32
    %c0_i32_3 = arith.constant 0 : i32
    return %c0_i32, %c0_i32_0, %c0_i32_1, %c0_i32_2 : i32, i32, i32, i32
  }
  func.func @transform_3(%arg0: i32) -> (i32, i32, i32, i32) {
    %c0_i32 = arith.constant 0 : i32
    %c0_i32_0 = arith.constant 0 : i32
    %c0_i32_1 = arith.constant 0 : i32
    %c0_i32_2 = arith.constant 0 : i32
    %c0_i32_3 = arith.constant 0 : i32
    return %c0_i32, %c0_i32_0, %c0_i32_1, %c0_i32_2 : i32, i32, i32, i32
  }
  func.func @transform_4(%arg0: i32) -> (i32, i32, i32) {
    %c0_i32 = arith.constant 0 : i32
    %c0_i32_0 = arith.constant 0 : i32
    %c0_i32_1 = arith.constant 0 : i32
    %c0_i32_2 = arith.constant 0 : i32
    return %c0_i32, %c0_i32_0, %c0_i32_1 : i32, i32, i32
  }
  func.func @transform_5(%arg0: i32) -> (i32, i32) {
    %c0_i32 = arith.constant 0 : i32
    %c0_i32_0 = arith.constant 0 : i32
    %c0_i32_1 = arith.constant 0 : i32
    return %c0_i32, %c0_i32_0 : i32, i32
  }
  func.func @transform_6(%arg0: i32) -> (i32, i32, i32, i32) {
    %c0_i32 = arith.constant 0 : i32
    %c0_i32_0 = arith.constant 0 : i32
    %c0_i32_1 = arith.constant 0 : i32
    %c0_i32_2 = arith.constant 0 : i32
    %c0_i32_3 = arith.constant 0 : i32
    return %c0_i32, %c0_i32_0, %c0_i32_1, %c0_i32_2 : i32, i32, i32, i32
  }
  func.func @transform_7(%arg0: i32) -> (i32, i32, i32, i32) {
    %c0_i32 = arith.constant 0 : i32
    %c0_i32_0 = arith.constant 0 : i32
    %c0_i32_1 = arith.constant 0 : i32
    %c0_i32_2 = arith.constant 0 : i32
    %c0_i32_3 = arith.constant 0 : i32
    return %c0_i32, %c0_i32_0, %c0_i32_1, %c0_i32_2 : i32, i32, i32, i32
  }
  func.func @transform_8(%arg0: i32) -> (i32, i32) {
    %c0_i32 = arith.constant 0 : i32
    %c0_i32_0 = arith.constant 0 : i32
    %c0_i32_1 = arith.constant 0 : i32
    return %c0_i32, %c0_i32_0 : i32, i32
  }
  func.func @transform_9(%arg0: i32) -> (i32, i32) {
    %c0_i32 = arith.constant 0 : i32
    %c0_i32_0 = arith.constant 0 : i32
    %c0_i32_1 = arith.constant 0 : i32
    return %c0_i32, %c0_i32_0 : i32, i32
  }
  func.func @transform_10(%arg0: i32) -> (i32, i32, i32) {
    %c0_i32 = arith.constant 0 : i32
    %c0_i32_0 = arith.constant 0 : i32
    %c0_i32_1 = arith.constant 0 : i32
    %c0_i32_2 = arith.constant 0 : i32
    return %c0_i32, %c0_i32_0, %c0_i32_1 : i32, i32, i32
  }
  func.func @transform_11(%arg0: i32) -> (i32, i32) {
    %c0_i32 = arith.constant 0 : i32
    %c0_i32_0 = arith.constant 0 : i32
    %c0_i32_1 = arith.constant 0 : i32
    return %c0_i32, %c0_i32_0 : i32, i32
  }
  func.func @transform_12(%arg0: i32) -> (i32, i32, i32) {
    %c0_i32 = arith.constant 0 : i32
    %c0_i32_0 = arith.constant 0 : i32
    %c0_i32_1 = arith.constant 0 : i32
    %c0_i32_2 = arith.constant 0 : i32
    return %c0_i32, %c0_i32_0, %c0_i32_1 : i32, i32, i32
  }
  func.func @transform_13(%arg0: i32) -> (i32, i32) {
    %c0_i32 = arith.constant 0 : i32
    %c0_i32_0 = arith.constant 0 : i32
    %c0_i32_1 = arith.constant 0 : i32
    return %c0_i32, %c0_i32_0 : i32, i32
  }
  func.func @transform_14(%arg0: i32) -> (i32, i32, i32, i32) {
    %c0_i32 = arith.constant 0 : i32
    %c0_i32_0 = arith.constant 0 : i32
    %c0_i32_1 = arith.constant 0 : i32
    %c0_i32_2 = arith.constant 0 : i32
    %c0_i32_3 = arith.constant 0 : i32
    return %c0_i32, %c0_i32_0, %c0_i32_1, %c0_i32_2 : i32, i32, i32, i32
  }
}

</mosaic_0001>

<bundles_post_ra>
// kernel: tpu_custom_call.1
= control target key start
LH: loop header
LB: loop body
LE: loop exit
PB: predicated region body
PF: predicated region fallthrough
CT: control target
= control target key end

     0   :  { %19 = vsyncpa [#allocation3], 0  ;;  %s4279_s0 = inlined_call_operand.hbm [shape: f32[1,2,2,16], index: 0, kind: input, shape index: {}]   ;;  %s4280_s1 = inlined_call_operand.hbm [shape: f32[2,8], index: 1, kind: input, shape index: {}]   ;;  %s4281_s2 = inlined_call_operand.hbm [shape: f32[2,2,2,4], index: 2, kind: input, shape index: {}]   ;;  %s4282_s3 = inlined_call_operand.hbm [shape: f32[2,2,2,4], index: 3, kind: input, shape index: {}]   ;;  %s4283_s4 = inlined_call_operand.hbm [shape: bf16[9,16,16], index: 4, kind: input, shape index: {}]   ;;  %s4284_s5 = inlined_call_operand.vmem [shape: f32[1,16], index: 5, kind: input, shape index: {}]   ;;  %s4285_s6 = inlined_call_operand.hbm [shape: f32[1,2,2,16], index: 6, kind: input, shape index: {}]   ;;  %s4286_s7 = inlined_call_operand.hbm [shape: f32[1,2,2,16], index: 7, kind: input, shape index: {}]   ;;  %s4287_s8 = inlined_call_operand.hbm [shape: bf16[8,64], index: 8, kind: input, shape index: {}]   ;;  %s4288_s9 = inlined_call_operand.hbm [shape: f32[1,64], index: 9, kind: input, shape index: {}]   ;;  %s4289_s10 = inlined_call_operand.vmem [shape: bf16[9,4,16], index: 10, kind: input, shape index: {}]   ;;  %s4290_s11 = inlined_call_operand.vmem [shape: f32[1,16], index: 11, kind: input, shape index: {}]   ;;  %s4291_s12 = inlined_call_operand.vmem [shape: bf16[9,4,16], index: 12, kind: input, shape index: {}]   ;;  %s4292_s13 = inlined_call_operand.vmem [shape: f32[1,16], index: 13, kind: input, shape index: {}]   ;;  %s4293_s14 = inlined_call_operand.hbm [shape: f32[2,2,2,16], index: 14, kind: output, shape index: {}]  }
   0x1   :  { %20 = vsyncpa [#allocation6], 0 }
   0x2   :  { %21 = vsyncpa [#allocation9], 0 }
   0x3   :  { %22 = vsyncpa [#allocation12], 0 }
   0x4   :  { %23 = vsyncpa [#allocation15], 0 }
   0x5   :  { %24 = vsyncpa [#allocation4], 0  ;;  %s3421_s29 = smov [#allocation5]   ;;  %s3189_s17 = scalar_lea.hbm %s4280_s1, 32 }
   0x6   :  { %s43_s30 = sshll.u32 %s3421_s29, 4  ;;  %p3190_p0 = scmp.ne.s32.totalorder %s4280_s1, %s3189_s17  ;;  %s44_s30 = int_to_ptr.vmem [resolvable:$true] %s43_s30 }
   0x7   :  { %p3193_p1 = scmp.lt.u32.totalorder %s3189_s17, %s4280_s1 }
   0x9   :  { %p3195_p2 = pnand %p3193_p1, %p3190_p0 }
   0xb   :  { %3198 = shalt.err (!%p3195_p2)
}
   0xc   :  { %s3199_s22 = scalar_lea.vmem %s44_s30, 32  ;;  %p3204_p4 = scmp.lt.s32.totalorder %s44_s30, %s44_s30 }
   0xd   :  { %p3200_p3 = scmp.ne.s32.totalorder %s44_s30, %s3199_s22  ;;  %p3205_p5 = scmp.lt.s32.totalorder %s3199_s22, %s3199_s22 }
   0xf   :  { %p3206_p6 = por %p3205_p5, %p3204_p4 }
  0x11   :  { %p3207_p7 = pnand %p3206_p6, %p3200_p3 }
  0x13   :  { %3210 = shalt.err (!%p3207_p7)
}
  0x14   :  { %46 = dma.hbm_to_vmem [thread:$0]  %s4280_s1, 32, %s44_s30, [#allocation6]  }
  0x15   :  { %s3422_s25 = smov [#allocation8]   ;;  %s3423_s27 = smov [#allocation11]  }
  0x16   :  { %s64_s26 = sshll.u32 %s3422_s25, 4  ;;  %s90_s28 = sshll.u32 %s3423_s27, 4  ;;  %s65_s26 = int_to_ptr.vmem [resolvable:$true] %s64_s26  ;;  %s91_s28 = int_to_ptr.vmem [resolvable:$true] %s90_s28 }
  0x17   :  { %s3211_s16 = scalar_lea.hbm %s4282_s3, 128 }
  0x18   :  { %p3212_p8 = scmp.ne.s32.totalorder %s4282_s3, %s3211_s16  ;;  %p3215_p9 = scmp.lt.u32.totalorder %s3211_s16, %s4282_s3 }
  0x1a   :  { %p3217_p10 = pnand %p3215_p9, %p3212_p8 }
  0x1c   :  { %3220 = shalt.err (!%p3217_p10)
}
  0x1d   :  { %s3221_s1 = scalar_lea.vmem %s65_s26, 128  ;;  %p3226_p12 = scmp.lt.s32.totalorder %s65_s26, %s65_s26 }
  0x1e   :  { %p3222_p11 = scmp.ne.s32.totalorder %s65_s26, %s3221_s1  ;;  %p3227_p13 = scmp.lt.s32.totalorder %s3221_s1, %s3221_s1 }
  0x20   :  { %p3228_p0 = por %p3227_p13, %p3226_p12 }
  0x22   :  { %p3229_p1 = pnand %p3228_p0, %p3222_p11 }
  0x24   :  { %3232 = shalt.err (!%p3229_p1)
}
  0x25   :  { %s3424_s30 = smov 32   ;;  %s3425_s21 = smov 2  }
  0x26   :  { %70 = dma.hbm_to_vmem [thread:$0]  %s4282_s3, 128, %s65_s26, [#allocation9], %s3424_s30, %s3424_s30, %s3425_s21  }
  0x27   :  { %s3233_s27 = scalar_lea.hbm %s4285_s6, 64 }
  0x28   :  { %p3234_p2 = scmp.ne.s32.totalorder %s4285_s6, %s3233_s27  ;;  %p3237_p3 = scmp.lt.u32.totalorder %s3233_s27, %s4285_s6 }
  0x2a   :  { %p3239_p4 = pnand %p3237_p3, %p3234_p2 }
  0x2c   :  { %3242 = shalt.err (!%p3239_p4)
}
  0x2d   :  { %s3243_s18 = scalar_lea.vmem %s91_s28, 64  ;;  %p3248_p6 = scmp.lt.s32.totalorder %s91_s28, %s91_s28 }
  0x2e   :  { %p3244_p5 = scmp.ne.s32.totalorder %s91_s28, %s3243_s18  ;;  %p3249_p7 = scmp.lt.s32.totalorder %s3243_s18, %s3243_s18 }
  0x30   :  { %p3250_p8 = por %p3249_p7, %p3248_p6 }
  0x32   :  { %p3251_p9 = pnand %p3250_p8, %p3244_p5 }
  0x34   :  { %3254 = shalt.err (!%p3251_p9)
}
  0x35   :  { %96 = dma.hbm_to_vmem [thread:$0]  %s4285_s6, 64, %s91_s28, [#allocation12], %s3424_s30, %s3424_s30, %s3425_s21  }
  0x36   :  { %s3426_s19 = smov [#allocation14]   ;;  %s3427_s1 = smov [#allocation2]  }
  0x37   :  { %s115_s20 = sshll.u32 %s3426_s19, 4  ;;  %s30_s22 = sshll.u32 %s3427_s1, 4  ;;  %s116_s20 = int_to_ptr.vmem [resolvable:$true] %s115_s20  ;;  %s31_s22 = int_to_ptr.vmem [resolvable:$true] %s30_s22 }
  0x38   :  { %s3255_s25 = scalar_lea.hbm %s4287_s8, 64 }
  0x39   :  { %p3256_p10 = scmp.ne.s32.totalorder %s4287_s8, %s3255_s25  ;;  %p3259_p11 = scmp.lt.u32.totalorder %s3255_s25, %s4287_s8 }
  0x3b   :  { %p3261_p12 = pnand %p3259_p11, %p3256_p10 }
  0x3d   :  { %3264 = shalt.err (!%p3261_p12)
}
  0x3e   :  { %s3265_s6 = scalar_lea.vmem %s116_s20, 64  ;;  %p3270_p0 = scmp.lt.s32.totalorder %s116_s20, %s116_s20 }
  0x3f   :  { %p3266_p13 = scmp.ne.s32.totalorder %s116_s20, %s3265_s6  ;;  %p3271_p1 = scmp.lt.s32.totalorder %s3265_s6, %s3265_s6 }
  0x41   :  { %p3272_p2 = por %p3271_p1, %p3270_p0 }
  0x43   :  { %p3273_p3 = pnand %p3272_p2, %p3266_p13 }
  0x45   :  { %3276 = shalt.err (!%p3273_p3)
}
  0x46   :  { %118 = dma.hbm_to_vmem [thread:$0]  %s4287_s8, 64, %s116_s20, [#allocation15]  }
  0x47   :  { %s3277_s26 = scalar_lea.hbm %s4279_s0, 64 }
  0x48   :  { %p3278_p4 = scmp.ne.s32.totalorder %s4279_s0, %s3277_s26  ;;  %p3281_p5 = scmp.lt.u32.totalorder %s3277_s26, %s4279_s0 }
  0x4a   :  { %p3283_p6 = pnand %p3281_p5, %p3278_p4 }
  0x4c   :  { %3286 = shalt.err (!%p3283_p6)
}
  0x4d   :  { %s3287_s25 = scalar_lea.vmem %s31_s22, 64  ;;  %p3292_p8 = scmp.lt.s32.totalorder %s31_s22, %s31_s22 }
  0x4e   :  { %p3288_p7 = scmp.ne.s32.totalorder %s31_s22, %s3287_s25  ;;  %p3293_p9 = scmp.lt.s32.totalorder %s3287_s25, %s3287_s25 }
  0x50   :  { %p3294_p10 = por %p3293_p9, %p3292_p8 }
  0x52   :  { %p3295_p11 = pnand %p3294_p10, %p3288_p7 }
  0x54   :  { %3298 = shalt.err (!%p3295_p11)
}
  0x55   :  { %36 = dma.hbm_to_vmem [thread:$0]  %s4279_s0, 64, %s31_s22, [#allocation3], %s3424_s30, %s3424_s30, %s3425_s21  }
  0x56   :  { %s3428_s27 = smov [#allocation7]   ;;  %s3429_s15 = smov [#allocation10]  }
  0x57   :  { %s52_s29 = sshll.u32 %s3428_s27, 4  ;;  %s76_s16 = sshll.u32 %s3429_s15, 4  ;;  %s53_s29 = int_to_ptr.vmem [resolvable:$true] %s52_s29  ;;  %s77_s16 = int_to_ptr.vmem [resolvable:$true] %s76_s16 }
  0x58   :  { %s3299_s17 = scalar_lea.hbm %s4281_s2, 128 }
  0x59   :  { %p3300_p12 = scmp.ne.s32.totalorder %s4281_s2, %s3299_s17  ;;  %p3303_p13 = scmp.lt.u32.totalorder %s3299_s17, %s4281_s2 }
  0x5b   :  { %p3305_p0 = pnand %p3303_p13, %p3300_p12 }
  0x5d   :  { %3308 = shalt.err (!%p3305_p0)
}
  0x5e   :  { %s3309_s0 = scalar_lea.vmem %s53_s29, 128  ;;  %p3314_p2 = scmp.lt.s32.totalorder %s53_s29, %s53_s29 }
  0x5f   :  { %p3310_p1 = scmp.ne.s32.totalorder %s53_s29, %s3309_s0  ;;  %p3315_p3 = scmp.lt.s32.totalorder %s3309_s0, %s3309_s0 }
  0x61   :  { %p3316_p4 = por %p3315_p3, %p3314_p2 }
  0x63   :  { %p3317_p5 = pnand %p3316_p4, %p3310_p1 }
  0x65   :  { %3320 = shalt.err (!%p3317_p5)
}
  0x66   :  { %58 = dma.hbm_to_vmem [thread:$0]  %s4281_s2, 128, %s53_s29, [#allocation6], %s3424_s30, %s3424_s30, %s3425_s21  }
  0x67   :  { %s3321_s25 = scalar_lea.hbm %s4283_s4, 1152 }
  0x68   :  { %p3322_p6 = scmp.ne.s32.totalorder %s4283_s4, %s3321_s25  ;;  %p3325_p7 = scmp.lt.u32.totalorder %s3321_s25, %s4283_s4 }
  0x6a   :  { %p3327_p8 = pnand %p3325_p7, %p3322_p6 }
  0x6c   :  { %3330 = shalt.err (!%p3327_p8)
}
  0x6d   :  { %s3331_s6 = scalar_lea.vmem %s77_s16, 1152  ;;  %p3336_p10 = scmp.lt.s32.totalorder %s77_s16, %s77_s16 }
  0x6e   :  { %p3332_p9 = scmp.ne.s32.totalorder %s77_s16, %s3331_s6  ;;  %p3337_p11 = scmp.lt.s32.totalorder %s3331_s6, %s3331_s6 }
  0x70   :  { %p3338_p12 = por %p3337_p11, %p3336_p10 }
  0x72   :  { %p3339_p13 = pnand %p3338_p12, %p3332_p9 }
  0x74   :  { %3342 = shalt.err (!%p3339_p13)
}
  0x75   :  { %s3430_s2 = smov 64   ;;  %s3431_s29 = smov 4  }
  0x76   :  { %82 = dma.hbm_to_vmem [thread:$0]  %s4283_s4, 1152, %s77_s16, [#allocation9], %s3430_s2, %s3430_s2, %s3431_s29  }
  0x77   :  { %s3432_s18 = smov [#allocation13]   ;;  %s3433_s26 = smov [#allocation16]  }
  0x78   :  { %s102_s3 = sshll.u32 %s3432_s18, 4  ;;  %s125_s19 = sshll.u32 %s3433_s26, 4  ;;  %s103_s3 = int_to_ptr.vmem [resolvable:$true] %s102_s3  ;;  %s126_s19 = int_to_ptr.vmem [resolvable:$true] %s125_s19 }
  0x79   :  { %s3343_s1 = scalar_lea.hbm %s4286_s7, 64 }
  0x7a   :  { %p3344_p0 = scmp.ne.s32.totalorder %s4286_s7, %s3343_s1  ;;  %p3347_p1 = scmp.lt.u32.totalorder %s3343_s1, %s4286_s7 }
  0x7c   :  { %p3349_p2 = pnand %p3347_p1, %p3344_p0 }
  0x7e   :  { %3352 = shalt.err (!%p3349_p2)
}
  0x7f   :  { %s3353_s4 = scalar_lea.vmem %s103_s3, 64  ;;  %p3358_p4 = scmp.lt.s32.totalorder %s103_s3, %s103_s3 }
  0x80   :  { %p3354_p3 = scmp.ne.s32.totalorder %s103_s3, %s3353_s4  ;;  %p3359_p5 = scmp.lt.s32.totalorder %s3353_s4, %s3353_s4 }
  0x82   :  { %p3360_p6 = por %p3359_p5, %p3358_p4 }
  0x84   :  { %p3361_p7 = pnand %p3360_p6, %p3354_p3 }
  0x86   :  { %3364 = shalt.err (!%p3361_p7)
}
  0x87   :  { %108 = dma.hbm_to_vmem [thread:$0]  %s4286_s7, 64, %s103_s3, [#allocation12], %s3424_s30, %s3424_s30, %s3425_s21  }
  0x88   :  { %s3365_s6 = scalar_lea.hbm %s4288_s9, 16 }
  0x89   :  { %p3366_p8 = scmp.ne.s32.totalorder %s4288_s9, %s3365_s6  ;;  %p3369_p9 = scmp.lt.u32.totalorder %s3365_s6, %s4288_s9 }
  0x8b   :  { %p3371_p10 = pnand %p3369_p9, %p3366_p8 }
  0x8d   :  { %3374 = shalt.err (!%p3371_p10)
}
  0x8e   :  { %s3375_s18 = scalar_lea.vmem %s126_s19, 16  ;;  %s3379_s26 = scalar_lea.vmem %s126_s19, 32 }
  0x8f   :  { %p3376_p11 = scmp.ne.s32.totalorder %s126_s19, %s3375_s18  ;;  %p3380_p12 = scmp.lt.s32.totalorder %s126_s19, %s126_s19 }
  0x90   :  { %p3381_p13 = scmp.lt.s32.totalorder %s3379_s26, %s3375_s18 }
  0x92   :  { %p3382_p0 = por %p3381_p13, %p3380_p12 }
  0x94   :  { %p3383_p1 = pnand %p3382_p0, %p3376_p11 }
  0x96   :  { %3386 = shalt.err (!%p3383_p1)
}
  0x97   :  { %128 = dma.hbm_to_vmem [thread:$0]  %s4288_s9, 16, %s126_s19, [#allocation15]  }
  0x98   :  { %3409 = dma.done.wait [#allocation3], 64  }
  0x99   :  { %3410 = vsyncadd [#allocation3], 4294967232 }
  0x9a   :  { %3411 = dma.done.wait [#allocation6], 160  }
  0x9b   :  { %3412 = vsyncadd [#allocation6], 4294967136 }
  0x9c   :  { %3413 = dma.done.wait [#allocation9], 1280  }
  0x9d   :  { %3414 = vsyncadd [#allocation9], 4294966016 }
  0x9e   :  { %3415 = dma.done.wait [#allocation12], 128  }
  0x9f   :  { %3416 = vsyncadd [#allocation12], 4294967168 }
  0xa0   :  { %3417 = dma.done.wait [#allocation15], 80  }
  0xa1   :  { %3418 = vsyncadd [#allocation15], 4294967216  ;;  %v3434_v0 = vmov 0.0   ;;  %vm3435_vm0 = vmmov 0   ;;  %vm291_vm1 = vcmask 1040384   ;;  %v311_v2 = vlaneseq  ;;  %s3440_s2 = smov 80  }
  0xa2   :  { %2971 = vmatprep.subr.bf16.mxu0 %v3434_v0  ;;  %2973 = vmatprep.mubr.msk.bf16.mxu0 %vm3435_vm0, %v3434_v0  ;;  %v281_v1 = vrot.slane %v3434_v0, 7  ;;  %vm297_vm2 = vcmask 1042432   ;;  %v3436_v4 = vmov 1983009808   ;;  %vm232_vm3 = vcmask 1043456  }
  0xa3   :  { %2977 = vmatprep.subr.bf16.mxu1 %v3434_v0  ;;  %2979 = vmatprep.mubr.msk.bf16.mxu1 %vm3435_vm0, %v3434_v0  ;;  %v309_v5 = vunpack.c.l.s4 %v3436_v4  ;;  %v3648_v6 = vshrl.u32 %v311_v2, 7  ;;  %vm390_vm4 = vcmask 1041408   ;;  %vm349_vm5 = vcmask 1042434   ;;  %v199_v9 = vld [vmem:[#allocation14] sm:$0xf] }
  0xa4   :  { %v292_v3 = vsel %vm291_vm1, 0.0, %v281_v1  ;;  %vm351_vm6 = vcmask 1044484   ;;  %v167_v10 = vld [vmem:[#allocation5] sm:$0x3]  ;;  %v202_v11 = vld [vmem:[%s4289_s10 + $0x2] sm:$0x3]  ;;  %vm3664_vm7 = vmor %vm291_vm1, %vm349_vm5 }
  0xa5   :  { %v310_v7 = vunpack.c.0.s8 %v309_v5  ;;  %v3651_v8 = vsel %vm297_vm2, %v292_v3, 0.0  ;;  %v234_v13 = vsel %vm232_vm3, %v199_v9, 0  ;;  %v221_v14 = vpack.c.bf16 %v167_v10, %v167_v10  ;;  %v201_v16 = vld [vmem:[%s4289_s10] sm:$0x3]  ;;  %v168_v17 = vld [vmem:[#allocation7] sm:$0x3]  ;;  %vm3681_vm9 = vmor %vm3664_vm7, %vm351_vm6 }
  0xa6   :  { %v392_v15 = vsel %vm390_vm4, %v202_v11, 0  ;;  %2972 = vmatpush3.bf16.msra.mxu0 %v234_v13  ;;  %vm228_vm8 = vcmask 64512   ;;  %v169_v19 = vld [vmem:[#allocation7 + $0x2] sm:$0x3]  ;;  %v170_v20 = vld [vmem:[#allocation7 + $0x4] sm:$0x3] }
  0xa7   :  { %v3657_v12 = vsub.s32 %v310_v7, %v3648_v6  ;;  %2978 = vmatpush3.bf16.msra.mxu1 %v392_v15  ;;  %v282_v21 = vrot.slane %v168_v17, 7  ;;  %2983 = vmatprep.subr.bf16.mxu0 %v3434_v0  ;;  %v438_v23 = vsel %vm390_vm4, %v201_v16, 0  ;;  %v171_v24 = vld [vmem:[#allocation7 + $0x6] sm:$0x3]  ;;  %v283_v25 = vrot.slane %v169_v19, 7 }
  0xa8   :  { %2989 = vmatprep.subr.bf16.mxu1 %v3434_v0  ;;  %v284_v26 = vrot.slane %v170_v20, 7  ;;  %v285_v27 = vrot.slane %v171_v24, 7  ;;  %vm353_vm10 = vcmask 1046534   ;;  %v204_v62 = vld [vmem:[%s4289_s10 + $0x6] sm:$0x3]  ;;  %vm386_vm12 = vcmask 31744  }
  0xa9   :  { %v3670_v22 = vrot.slane %v3651_v8, %v3657_v12  ;;  %v293_v28 = vsel %vm291_vm1, 0.0, %v282_v21  ;;  %2974 = vmatmul.mubr.msk.bf16.vlgmr.msra.gmra.mrb[0].mxu0 %vm228_vm8, %v221_v14  ;;  %v294_v31 = vsel %vm291_vm1, 0.0, %v283_v25  ;;  %vm3708_vm11 = vmor %vm3681_vm9, %vm353_vm10  ;;  %v203_v13 = vld [vmem:[%s4289_s10 + $0x4] sm:$0x3]  ;;  %v571_v14 = vsel %vm390_vm4, %v204_v62, 0 }
  0xaa   :  { %v295_v32 = vsel %vm291_vm1, 0.0, %v284_v26  ;;  %v299_v33 = vsel %vm297_vm2, %v293_v28, 0.0  ;;  %2984 = vmatpush3.bf16.msra.mxu0 %v438_v23  ;;  %2985 = vmatprep.mubr.msk.bf16.mxu0 %vm3435_vm0, %v3434_v0  ;;  %v296_v35 = vsel %vm291_vm1, 0.0, %v285_v27  ;;  %v3694_v36 = vsel %vm297_vm2, %v294_v31, 0.0 }
  0xab   :  { %v332_v29 = vcombine.high %v3670_v22, %v3670_v22  ;;  %v2845_v34 = vrot.slane %v3670_v22, 9  ;;  %v301_v37 = vsel %vm297_vm2, %v295_v32, 0.0  ;;  %v3698_v38 = vrot.slane %v299_v33, %v3657_v12  ;;  %2995 = vmatprep.subr.bf16.mxu0 %v3434_v0 }
  0xac   :  { %v3701_v39 = vsel %vm297_vm2, %v296_v35, 0.0  ;;  %v3704_v40 = vrot.slane %v301_v37, %v3657_v12  ;;  %v3714_v43 = vrot.slane %v3694_v36, %v3657_v12  ;;  %v306_v47 = vcombine.low %v3651_v8, %v299_v33 }
  0xad   :  { %v357_v42 = vrot.slane %v332_v29, 7  ;;  %v340_v44 = vcombine.high %v3698_v38, %v3698_v38  ;;  %v2846_v45 = vrot.slane %v3698_v38, 9  ;;  %v3722_v46 = vrot.slane %v3701_v39, %v3657_v12 }
  0xae   :  { %v348_v48 = vcombine.high %v3704_v40, %v3704_v40  ;;  %v2847_v49 = vrot.slane %v3704_v40, 9  ;;  %v621_v50 = vcombine.high %v3714_v43, %v3714_v43  ;;  %v2854_v54 = vrot.slane %v3714_v43, 9 }
  0xaf   :  { %v3732_v51 = vsel %vm3708_vm11, %v2845_v34, %v357_v42  ;;  %v361_v52 = vrot.slane %v340_v44, 7  ;;  %v629_v53 = vcombine.high %v3722_v46, %v3722_v46  ;;  %v2855_v56 = vrot.slane %v3722_v46, 9 }
  0xb0   :  { %v365_v55 = vrot.slane %v348_v48, 7  ;;  %v307_v57 = vcombine.low %v3651_v8, %v301_v37  ;;  %v314_v58 = vrot.slane %v306_v47, %v3657_v12  ;;  %v632_v60 = vrot.slane %v621_v50, 7 }
  0xb1   :  { %v362_v59 = vsel %vm3708_vm11, %v2846_v45, %v361_v52  ;;  %v636_v61 = vrot.slane %v629_v53, 7  ;;  %v2850_v4 = vcombine.high %v3670_v22, %v3698_v38  ;;  %v2851_v10 = vcombine.high %v3670_v22, %v3704_v40  ;;  %v208_v53 = vld [vmem:[%s4289_s10 + $0xe] sm:$0x3] }
  0xb2   :  { %v366_v63 = vsel %vm3708_vm11, %v2847_v49, %v365_v55  ;;  %v367_v1 = vcombine.low %v3732_v51, %v362_v59  ;;  %v321_v2 = vrot.slane %v307_v57, %v3657_v12  ;;  %v548_v15 = vcombine.low %v299_v33, %v3694_v36  ;;  %v206_v33 = vld [vmem:[%s4289_s10 + $0xa] sm:$0x3] }
  0xb3   :  { %v368_v3 = vcombine.low %v3732_v51, %v366_v63  ;;  %v549_v16 = vcombine.low %v301_v37, %v3701_v39  ;;  %v633_v18 = vsel %vm3708_vm11, %v2854_v54, %v632_v60  ;;  %v488_v19 = vrot.slane %v2850_v4, %v3657_v12 }
  0xb4   :  { %v375_v5 = vrot.slane %v367_v1, %v3657_v12  ;;  %v322_v7 = vcombine.low %v314_v58, %v321_v2  ;;  %v495_v20 = vrot.slane %v2851_v10, %v3657_v12  ;;  %v637_v21 = vsel %vm3708_vm11, %v2855_v56, %v636_v61 }
  0xb5   :  { %v382_v9 = vrot.slane %v368_v3, %v3657_v12  ;;  %v556_v23 = vrot.slane %v548_v15, %v3657_v12  ;;  %v563_v24 = vrot.slane %v549_v16, %v3657_v12  ;;  %v2857_v25 = vcombine.high %v3698_v38, %v3714_v43  ;;  %v205_v38 = vld [vmem:[%s4289_s10 + $0x8] sm:$0x3]  ;;  %v2843_v16 = vld [vmem:[#allocation16] ss:$0 sm:$0xff] }
  0xb6   :  { %v324_v11 = vpack.c.bf16 %v322_v7, %v322_v7  ;;  %v503_v27 = vsel %vm390_vm4, %v203_v13, 0  ;;  %v2858_v29 = vcombine.high %v3704_v40, %v3722_v46  ;;  %v638_v30 = vcombine.low %v362_v59, %v633_v18  ;;  %v207_v59 = vld [vmem:[%s4289_s10 + $0xc] sm:$0x3] }
  0xb7   :  { %v383_v17 = vcombine.low %v375_v5, %v382_v9  ;;  %v564_v28 = vcombine.low %v556_v23, %v563_v24  ;;  %v639_v31 = vcombine.low %v366_v63, %v637_v21  ;;  %v496_v32 = vcombine.low %v488_v19, %v495_v20  ;;  %v209_v5 = vld [vmem:[%s4289_s10 + $0x10] sm:$0x3]  ;;  %s3438_s10 = smov 112  }
  0xb8   :  { %2986 = vmatmul.mubr.msk.bf16.vlgmr.msra.gmra.mrb[4].mxu0 %vm386_vm12, %v324_v11  ;;  %v712_v35 = vrot.slane %v2857_v25, %v3657_v12  ;;  %v719_v37 = vrot.slane %v2858_v29, %v3657_v12  ;;  %v727_v40 = vsel %vm390_vm4, %v206_v33, 0  ;;  %v646_v44 = vrot.slane %v638_v30, %v3657_v12 }
  0xb9   :  { %v385_v26 = vpack.c.bf16 %v383_v17, %v383_v17  ;;  %2996 = vmatpush3.bf16.msra.mxu0 %v571_v14  ;;  %2997 = vmatprep.mubr.msk.bf16.mxu0 %vm3435_vm0, %v3434_v0  ;;  %v566_v34 = vpack.c.bf16 %v564_v28, %v564_v28  ;;  %v498_v42 = vpack.c.bf16 %v496_v32, %v496_v32  ;;  %v661_v50 = vsel %vm390_vm4, %v205_v38, 0  ;;  %v3160_v38 = vld [vmem:[#allocation10] sm:$0xff]  }
  0xba   :  { %3007 = vmatprep.subr.bf16.mxu0 %v3434_v0  ;;  %v653_v45 = vrot.slane %v639_v31, %v3657_v12  ;;  %v836_v47 = vcombine.low %v633_v18, %v3732_v51  ;;  %v837_v48 = vcombine.low %v637_v21, %v3732_v51  ;;  %v720_v49 = vcombine.low %v712_v35, %v719_v37 }
  0xbb   :  { %2980 = vmatmul.mubr.msk.bf16.vlgmr.msra.gmra.mrb[0].mxu1 %vm386_vm12, %v385_v26  ;;  %v770_v54 = vcombine.low %v3694_v36, %v3651_v8  ;;  %v771_v55 = vcombine.low %v3701_v39, %v3651_v8  ;;  %v859_v36 = vsel %vm390_vm4, %v208_v53, 0  ;;  %v793_v63 = vsel %vm390_vm4, %v207_v59, 0 }
  0xbc   :  { %2990 = vmatpush3.bf16.msra.mxu1 %v503_v27  ;;  %2991 = vmatprep.mubr.msk.bf16.mxu1 %vm3435_vm0, %v3434_v0  ;;  %v654_v52 = vcombine.low %v646_v44, %v653_v45  ;;  %v722_v56 = vpack.c.bf16 %v720_v49, %v720_v49  ;;  %v844_v57 = vrot.slane %v836_v47, %v3657_v12  ;;  %v3437_v13 = vmov 1966171168  }
  0xbd   :  { %3001 = vmatprep.subr.bf16.mxu1 %v3434_v0  ;;  %v851_v58 = vrot.slane %v837_v48, %v3657_v12  ;;  %v778_v39 = vrot.slane %v770_v54, %v3657_v12  ;;  %v785_v61 = vrot.slane %v771_v55, %v3657_v12  ;;  %v2862_v2 = vcombine.high %v3714_v43, %v3670_v22 }
  0xbe   :  { %v656_v60 = vpack.c.bf16 %v654_v52, %v654_v52  ;;  %v2863_v3 = vcombine.high %v3722_v46, %v3670_v22  ;;  %v925_v43 = vsel %vm390_vm4, %v209_v5, 0  ;;  %v1109_v14 = vunpack.c.l.s4 %v3437_v13  ;;  %v2865_v13 = vld [vmem:[%s4290_s11] ss:$0 sm:$0xff] }
  0xbf   :  { %v852_v62 = vcombine.low %v844_v57, %v851_v58  ;;  %v786_v1 = vcombine.low %v778_v39, %v785_v61  ;;  %v910_v9 = vrot.slane %v2862_v2, %v3657_v12  ;;  %v1132_v24 = vsub.s32 0, %v3648_v6 }
  0xc0   :  { %2998 = vmatmul.mubr.msk.bf16.vlgmr.msra.gmra.mrb[8].mxu0 %vm386_vm12, %v566_v34  ;;  %v917_v10 = vrot.slane %v2863_v3, %v3657_v12  ;;  %v1110_v15 = vunpack.c.0.s8 %v1109_v14  ;;  %vm1001_vm13 = vcmask 123904   ;;  %vm1030_vm14 = vcmask 130048  }
  0xc1   :  { %3008 = vmatpush3.bf16.msra.mxu0 %v727_v40  ;;  %3009 = vmatprep.mubr.msk.bf16.mxu0 %vm3435_vm0, %v3434_v0  ;;  %v854_v4 = vpack.c.bf16 %v852_v62, %v852_v62  ;;  %v788_v7 = vpack.c.bf16 %v786_v1, %v786_v1 }
  0xc2   :  { %3019 = vmatprep.subr.bf16.mxu0 %v3434_v0  ;;  %v918_v46 = vcombine.low %v910_v9, %v917_v10  ;;  %v1113_v17 = vsub.s32 %v1110_v15, %v3648_v6 }
  0xc3   :  { %2992 = vmatmul.mubr.msk.bf16.vlgmr.msra.gmra.mrb[4].mxu1 %vm386_vm12, %v498_v42  ;;  %v3161_v42 = vld [vmem:[#allocation10 + $0x8] sm:$0xff]  }
  0xc4   :  { %3002 = vmatpush3.bf16.msra.mxu1 %v661_v50  ;;  %3003 = vmatprep.mubr.msk.bf16.mxu1 %vm3435_vm0, %v3434_v0  ;;  %v920_v11 = vpack.c.bf16 %v918_v46, %v918_v46 }
  0xc5   :  { %3013 = vmatprep.subr.bf16.mxu1 %v3434_v0 }
  0xc8   :  { %3010 = vmatmul.mubr.msk.bf16.vlgmr.msra.gmra.mrb[12].mxu0 %vm386_vm12, %v722_v56 }
  0xc9   :  { %3020 = vmatpush3.bf16.msra.mxu0 %v859_v36  ;;  %3021 = vmatprep.mubr.msk.bf16.mxu0 %vm3435_vm0, %v3434_v0 }
  0xca   :  { %3031 = vmatprep.subr.bf16.mxu0 %v3434_v0 }
  0xcb   :  { %3004 = vmatmul.mubr.msk.bf16.vlgmr.msra.gmra.mrb[8].mxu1 %vm386_vm12, %v656_v60 }
  0xcc   :  { %3014 = vmatpush3.bf16.msra.mxu1 %v793_v63  ;;  %3015 = vmatprep.mubr.msk.bf16.mxu1 %vm3435_vm0, %v3434_v0 }
  0xcd   :  { %3025 = vmatprep.subr.bf16.mxu1 %v3434_v0 }
  0xd0   :  { %3022 = vmatmul.mubr.msk.bf16.vlgmr.msra.gmra.mrb[16].mxu0 %vm386_vm12, %v854_v4 }
  0xd1   :  { %3033 = vmatprep.mubr.msk.bf16.mxu0 %vm3435_vm0, %v3434_v0  ;;  %3032 = vmatpush3.bf16.msra.mxu0 %v3161_v42 }
  0xd2   :  { %3043 = vmatprep.subr.bf16.mxu0 %v3434_v0 }
  0xd3   :  { %3016 = vmatmul.mubr.msk.bf16.vlgmr.msra.gmra.mrb[12].mxu1 %vm386_vm12, %v788_v7 }
  0xd4   :  { %3026 = vmatpush3.bf16.msra.mxu1 %v925_v43  ;;  %3027 = vmatprep.mubr.msk.bf16.mxu1 %vm3435_vm0, %v3434_v0 }
  0xd5   :  { %3037 = vmatprep.subr.bf16.mxu1 %v3434_v0 }
  0xdb   :  { %3028 = vmatmul.mubr.msk.bf16.vlgmr.msra.gmra.mrb[16].mxu1 %vm386_vm12, %v920_v11 }
  0xdc   :  { %3039 = vmatprep.mubr.msk.bf16.mxu1 %vm3435_vm0, %v3434_v0  ;;  %3038 = vmatpush3.bf16.msra.mxu1 %v3160_v38 }
  0xdd   :  { %3049 = vmatprep.subr.bf16.mxu1 %v3434_v0 }
 0x17c   :  { %v270_v18 = vpop.f32.mrb[0].mxu0 }
 0x17d   :  { %v271_v19 = vadd.f32 %v2843_v16, %v270_v18  ;;  %v2975_v20 = vpop.f32.mrb[1].mxu0 }
 0x17e   :  { %v273_v21 = vpop.f32.mrb[2].mxu0  ;;  %v165_v20 = vld [vmem:[#allocation2] sm:$0x3] }
 0x17f   :  { %v1114_v23 = vrot.slane %v271_v19, %v1113_v17  ;;  %v2976_v25 = vpop.f32.mrb[3].mxu0 }
 0x181   :  { %v1115_v26 = vcombine.high %v1114_v23, %v1114_v23  ;;  %v1122_v27 = vrot.slane %v1114_v23, %v1113_v17 }
 0x183   :  { %v1129_v28 = vrot.slane %v1115_v26, %v1113_v17  ;;  %v3851_v29 = vrot.slane %v1122_v27, %v1132_v24 }
 0x185   :  { %v3853_v30 = vrot.slane %v1129_v28, %v1132_v24  ;;  %1144 = vrot.lane.b32.xlu0 %v3851_v29, %s3438_s10  ;;  %v166_v24 = vld [vmem:[#allocation2 + $0x2] sm:$0x3] }
 0x189   :  { %1146 = vrot.lane.b32.xlu0 %v3853_v30, %s3438_s10 }
 0x18b   :  { %v474_v31 = vpop.f32.mrb[4].mxu0 }
 0x18c   :  { %v2987_v32 = vpop.f32.mrb[5].mxu0 }
 0x18d   :  { %v477_v33 = vpop.f32.mrb[6].mxu0 }
 0x18e   :  { %v428_v34 = vpop.f32.mrb[0].mxu1  ;;  %v2988_v35 = vpop.f32.mrb[7].mxu0 }
 0x18f   :  { %v475_v37 = vadd.f32 %v474_v31, %v428_v34  ;;  %v2981_v6 = vpop.f32.mrb[1].mxu1 }
 0x190   :  { %v431_v40 = vpop.f32.mrb[2].mxu1 }
 0x191   :  { %v2982_v44 = vpop.f32.mrb[3].mxu1 }
 0x193   :  { %v607_v45 = vpop.f32.mrb[8].mxu0 }
 0x194   :  { %v2999_v47 = vpop.f32.mrb[9].mxu0 }
 0x195   :  { %v610_v48 = vpop.f32.mrb[10].mxu0 }
 0x196   :  { %v539_v49 = vpop.f32.mrb[4].mxu1  ;;  %v3000_v50 = vpop.f32.mrb[11].mxu0 }
 0x197   :  { %v545_v52 = vadd.f32 %v539_v49, %v475_v37  ;;  %v2993_v53 = vpop.f32.mrb[5].mxu1 }
 0x198   :  { %v542_v54 = vpop.f32.mrb[6].mxu1 }
 0x199   :  { %v613_v55 = vadd.f32 %v607_v45, %v545_v52  ;;  %v2994_v56 = vpop.f32.mrb[7].mxu1 }
 0x19b   :  { %v763_v57 = vpop.f32.mrb[12].mxu0 }
 0x19c   :  { %v3011_v58 = vpop.f32.mrb[13].mxu0 }
 0x19d   :  { %v766_v59 = vpop.f32.mrb[14].mxu0 }
 0x19e   :  { %v697_v36 = vpop.f32.mrb[8].mxu1  ;;  %v3012_v60 = vpop.f32.mrb[15].mxu0 }
 0x19f   :  { %v703_v39 = vadd.f32 %v697_v36, %v613_v55  ;;  %v3005_v61 = vpop.f32.mrb[9].mxu1 }
 0x1a0   :  { %v700_v62 = vpop.f32.mrb[10].mxu1 }
 0x1a1   :  { %v769_v63 = vadd.f32 %v763_v57, %v703_v39  ;;  %v3006_v1 = vpop.f32.mrb[11].mxu1 }
 0x1a3   :  { %v895_v2 = vpop.f32.mrb[16].mxu0 }
 0x1a4   :  { %v3023_v3 = vpop.f32.mrb[17].mxu0 }
 0x1a5   :  { %v898_v4 = vpop.f32.mrb[18].mxu0 }
 0x1a6   :  { %v829_v5 = vpop.f32.mrb[12].mxu1  ;;  %v3024_v7 = vpop.f32.mrb[19].mxu0 }
 0x1a7   :  { %v835_v9 = vadd.f32 %v829_v5, %v769_v63  ;;  %v3017_v10 = vpop.f32.mrb[13].mxu1 }
 0x1a8   :  { %v832_v43 = vpop.f32.mrb[14].mxu1 }
 0x1a9   :  { %v901_v46 = vadd.f32 %v895_v2, %v835_v9  ;;  %v3018_v11 = vpop.f32.mrb[15].mxu1 }
 0x1ae   :  { %v961_v14 = vpop.f32.mrb[16].mxu1 }
 0x1af   :  { %v967_v15 = vadd.f32 %v961_v14, %v901_v46  ;;  %v3029_v16 = vpop.f32.mrb[17].mxu1 }
 0x1b0   :  { %v964_v17 = vpop.f32.mrb[18].mxu1 }
 0x1b1   :  { %v974_v18 = vadd.f32 %v2865_v13, %v967_v15  ;;  %v3030_v19 = vpop.f32.mrb[19].mxu1 }
 0x1b3   :  { %v976_v21 = vcombine.high %v974_v18, %v974_v18  ;;  %v983_v23 = vrot.slane %v974_v18, %v3657_v12 }
 0x1b5   :  { %v990_v25 = vrot.slane %v976_v21, %v3657_v12  ;;  %v991_v26 = vcombine.high %v983_v23, %v983_v23  ;;  %v997_v27 = vadd.f32 %v983_v23, %v165_v20 }
 0x1b7   :  { %v992_v28 = vcombine.high %v990_v25, %v990_v25  ;;  %v998_v31 = vadd.f32 %v991_v26, %v166_v24  ;;  %v999_v32 = vadd.f32 %v990_v25, %v165_v20  ;;  %v1002_v33 = vsel %vm1001_vm13, %v997_v27, 0.0 }
 0x1b8   :  { %v1003_v34 = vrot.slane %v1002_v33, 4 }
 0x1b9   :  { %v1009_v35 = vsel %vm1001_vm13, %v998_v31, 0.0  ;;  %v1016_v37 = vsel %vm1001_vm13, %v999_v32, 0.0  ;;  %v1000_v6 = vadd.f32 %v992_v28, %v166_v24 }
 0x1ba   :  { %v1004_v38 = vadd.f32 %v1003_v34, %v1002_v33  ;;  %v1010_v40 = vrot.slane %v1009_v35, 4  ;;  %v1017_v42 = vrot.slane %v1016_v37, 4 }
 0x1bb   :  { %v1023_v44 = vsel %vm1001_vm13, %v1000_v6, 0.0 }
 0x1bc   :  { %v1005_v45 = vrot.slane %v1004_v38, 2  ;;  %v1011_v47 = vadd.f32 %v1010_v40, %v1009_v35  ;;  %v1018_v48 = vadd.f32 %v1017_v42, %v1016_v37  ;;  %v1024_v49 = vrot.slane %v1023_v44, 4 }
 0x1be   :  { %v1006_v50 = vadd.f32 %v1005_v45, %v1004_v38  ;;  %v1012_v52 = vrot.slane %v1011_v47, 2  ;;  %v1019_v53 = vrot.slane %v1018_v48, 2  ;;  %v1025_v54 = vadd.f32 %v1024_v49, %v1023_v44 }
 0x1c0   :  { %v1007_v55 = vrot.slane %v1006_v50, 1  ;;  %v1013_v56 = vadd.f32 %v1012_v52, %v1011_v47  ;;  %v1020_v57 = vadd.f32 %v1019_v53, %v1018_v48  ;;  %v1026_v58 = vrot.slane %v1025_v54, 2 }
 0x1c2   :  { %v1008_v59 = vadd.f32 %v1007_v55, %v1006_v50  ;;  %v1014_v36 = vrot.slane %v1013_v56, 1  ;;  %v1021_v60 = vrot.slane %v1020_v57, 1  ;;  %v1027_v39 = vadd.f32 %v1026_v58, %v1025_v54 }
 0x1c4   :  { %v1015_v61 = vadd.f32 %v1014_v36, %v1013_v56  ;;  %v1022_v62 = vadd.f32 %v1021_v60, %v1020_v57  ;;  %v1028_v63 = vrot.slane %v1027_v39, 1  ;;  %v1031_v1 = vsel %vm1030_vm14, %v1008_v59, 0.0 }
 0x1c6   :  { %v1032_v2 = vsel %vm1030_vm14, %v1015_v61, 0.0  ;;  %v1029_v3 = vadd.f32 %v1028_v63, %v1027_v39  ;;  %v1034_v5 = vsel %vm1030_vm14, %v1022_v62, 0.0 }
 0x1c7   :  { %v1033_v4 = vadd.f32 %v1032_v2, %v1031_v1 }
 0x1c8   :  { %v1035_v7 = vsel %vm1030_vm14, %v1029_v3, 0.0 }
 0x1c9   :  { %v1038_v9 = vmul.f32 0.25, %v1033_v4  ;;  %v1036_v10 = vadd.f32 %v1035_v7, %v1034_v5 }
 0x1cb   :  { %v3872_v43 = vsub.f32 %v997_v27, %v1038_v9  ;;  %v3874_v46 = vsub.f32 %v998_v31, %v1038_v9  ;;  %v1039_v11 = vmul.f32 0.25, %v1036_v10 }
 0x1cd   :  { %v1044_v13 = vmul.f32 %v3872_v43, %v3872_v43  ;;  %v1045_v14 = vmul.f32 %v3874_v46, %v3874_v46  ;;  %v3880_v15 = vsub.f32 %v999_v32, %v1039_v11  ;;  %v3882_v16 = vsub.f32 %v1000_v6, %v1039_v11 }
 0x1cf   :  { %v1048_v17 = vsel %vm1001_vm13, %v1044_v13, 0.0  ;;  %v1055_v18 = vsel %vm1001_vm13, %v1045_v14, 0.0  ;;  %v1046_v19 = vmul.f32 %v3880_v15, %v3880_v15  ;;  %v1047_v20 = vmul.f32 %v3882_v16, %v3882_v16 }
 0x1d0   :  { %v1049_v21 = vrot.slane %v1048_v17, 4  ;;  %v1056_v23 = vrot.slane %v1055_v18, 4 }
 0x1d1   :  { %v1062_v24 = vsel %vm1001_vm13, %v1046_v19, 0.0  ;;  %v1069_v25 = vsel %vm1001_vm13, %v1047_v20, 0.0 }
 0x1d2   :  { %v1050_v26 = vadd.f32 %v1049_v21, %v1048_v17  ;;  %v1057_v27 = vadd.f32 %v1056_v23, %v1055_v18  ;;  %v1063_v28 = vrot.slane %v1062_v24, 4  ;;  %v1070_v31 = vrot.slane %v1069_v25, 4 }
 0x1d4   :  { %v1051_v32 = vrot.slane %v1050_v26, 2  ;;  %v1058_v33 = vrot.slane %v1057_v27, 2  ;;  %v1064_v34 = vadd.f32 %v1063_v28, %v1062_v24  ;;  %v1071_v35 = vadd.f32 %v1070_v31, %v1069_v25 }
 0x1d6   :  { %v1052_v37 = vadd.f32 %v1051_v32, %v1050_v26  ;;  %v1059_v6 = vadd.f32 %v1058_v33, %v1057_v27  ;;  %v1065_v38 = vrot.slane %v1064_v34, 2  ;;  %v1072_v40 = vrot.slane %v1071_v35, 2 }
 0x1d8   :  { %v1053_v42 = vrot.slane %v1052_v37, 1  ;;  %v1060_v44 = vrot.slane %v1059_v6, 1  ;;  %v1066_v45 = vadd.f32 %v1065_v38, %v1064_v34  ;;  %v1073_v47 = vadd.f32 %v1072_v40, %v1071_v35 }
 0x1da   :  { %v1054_v48 = vadd.f32 %v1053_v42, %v1052_v37  ;;  %v1061_v49 = vadd.f32 %v1060_v44, %v1059_v6  ;;  %v1067_v50 = vrot.slane %v1066_v45, 1  ;;  %v1074_v52 = vrot.slane %v1073_v47, 1 }
 0x1dc   :  { %v1076_v53 = vsel %vm1030_vm14, %v1054_v48, 0.0  ;;  %v1077_v54 = vsel %vm1030_vm14, %v1061_v49, 0.0  ;;  %v1068_v55 = vadd.f32 %v1067_v50, %v1066_v45  ;;  %v1075_v56 = vadd.f32 %v1074_v52, %v1073_v47 }
 0x1dd   :  { %v1078_v57 = vadd.f32 %v1077_v54, %v1076_v53 }
 0x1de   :  { %v1079_v58 = vsel %vm1030_vm14, %v1068_v55, 0.0  ;;  %v1080_v59 = vsel %vm1030_vm14, %v1075_v56, 0.0 }
 0x1df   :  { %v1083_v36 = vmul.f32 0.33333334, %v1078_v57  ;;  %v1081_v60 = vadd.f32 %v1080_v59, %v1079_v58 }
 0x1e1   :  { %3169 = vrsqrt.f32 %v1083_v36  ;;  %v1084_v39 = vmul.f32 0.33333334, %v1081_v60  ;;  %vm1087_vm15 = vcmp.eq.f32.partialorder %v1083_v36, inf  ;;  %v1090_v63 = vand.u32 2147483648, %v1083_v36 }
 0x1e2   :  { %vm1089_vm3 = vcmp.eq.f32.partialorder %v1083_v36, 0.0 }
 0x1e3   :  { %3171 = vrsqrt.f32 %v1084_v39  ;;  %vm1094_vm5 = vcmp.eq.f32.partialorder %v1084_v39, inf  ;;  %v1097_v7 = vand.u32 2147483648, %v1084_v39  ;;  %vm1096_vm6 = vcmp.eq.f32.partialorder %v1084_v39, 0.0 }
 0x1eb   :  { %v3170_v61 = vpop.eup %3169 }
 0x1ec   :  { %v1086_v62 = vmul.f32 %v3170_v61, %v1083_v36 }
 0x1ed   :  { %v3172_v1 = vpop.eup %3171 }
 0x1ee   :  { %v1088_v2 = vsel %vm1087_vm15, %v1083_v36, %v1086_v62  ;;  %v1093_v4 = vmul.f32 %v3172_v1, %v1084_v39 }
 0x1ef   :  { %v1091_v3 = vsel %vm1089_vm3, %v1090_v63, %v1088_v2  ;;  %v3162_v63 = vld [vmem:[#allocation10 + $0x18] sm:$0xff]  }
 0x1f0   :  { %v1099_v5 = vadd.f32 1e-09, %v1091_v3  ;;  %v1095_v9 = vsel %vm1094_vm5, %v1084_v39, %v1093_v4 }
 0x1f1   :  { %v1098_v10 = vsel %vm1096_vm6, %v1097_v7, %v1095_v9 }
 0x1f2   :  { %3173 = vrcp.f32 %v1099_v5  ;;  %v1100_v11 = vadd.f32 1e-09, %v1098_v10 }
 0x1f4   :  { %3175 = vrcp.f32 %v1100_v11 }
 0x1f7   :  { %v1145_v14 = vpop.permute.xlu0 %1144 }
 0x1fb   :  { %v1147_v31 = vpop.permute.xlu0 %1146 }
 0x1fc   :  { %v3174_v13 = vpop.eup %3173 }
 0x1fd   :  { %v1102_v17 = vmul.f32 %v3174_v13, %v3872_v43  ;;  %v1103_v18 = vmul.f32 %v3174_v13, %v3874_v46 }
 0x1fe   :  { %v3176_v19 = vpop.eup %3175 }
 0x1ff   :  { %v1140_v20 = vmul.f32 %v3851_v29, %v1102_v17  ;;  %v1141_v21 = vmul.f32 %v3851_v29, %v1103_v18  ;;  %v1105_v23 = vmul.f32 %v3176_v19, %v3880_v15  ;;  %v1106_v24 = vmul.f32 %v3176_v19, %v3882_v16 }
 0x201   :  { %v3902_v25 = vadd.f32 %v1145_v14, %v1140_v20  ;;  %v3904_v26 = vadd.f32 %v1145_v14, %v1141_v21  ;;  %v1142_v27 = vmul.f32 %v3853_v30, %v1105_v23  ;;  %v1143_v28 = vmul.f32 %v3853_v30, %v1106_v24 }
 0x203   :  { %v1158_v43 = vrot.slane %v3902_v25, 7  ;;  %v1159_v46 = vrot.slane %v3904_v26, 7  ;;  %v3910_v32 = vadd.f32 %v1147_v31, %v1142_v27  ;;  %v3912_v33 = vadd.f32 %v1147_v31, %v1143_v28  ;;  %v3163_v27 = vld [vmem:[#allocation10 + $0x10] sm:$0xff]  }
 0x205   :  { %v1166_v15 = vsel %vm291_vm1, 0.0, %v1158_v43  ;;  %v1160_v34 = vrot.slane %v3910_v32, 7  ;;  %v1161_v35 = vrot.slane %v3912_v33, 7  ;;  %v1167_v37 = vsel %vm291_vm1, 0.0, %v1159_v46  ;;  %v3164_v46 = vld [vmem:[#allocation10 + $0x28] sm:$0xff]  }
 0x206   :  { %v1170_v16 = vsel %vm297_vm2, %v1166_v15, 0.0  ;;  %v3924_v45 = vsel %vm297_vm2, %v1167_v37, 0.0 }
 0x207   :  { %v1201_v6 = vrot.slane %v1170_v16, %v3657_v12  ;;  %v1176_v38 = vcombine.low %v3651_v8, %v1170_v16  ;;  %v1168_v40 = vsel %vm291_vm1, 0.0, %v1160_v34  ;;  %v1169_v42 = vsel %vm291_vm1, 0.0, %v1161_v35 }
 0x208   :  { %v1172_v48 = vsel %vm297_vm2, %v1168_v40, 0.0  ;;  %v3928_v50 = vsel %vm297_vm2, %v1169_v42, 0.0  ;;  %v1407_v36 = vcombine.low %v1170_v16, %v3924_v45  ;;  %v3946_v60 = vrot.slane %v3924_v45, %v3657_v12 }
 0x209   :  { %v1202_v44 = vcombine.high %v1201_v6, %v1201_v6  ;;  %v2866_v47 = vrot.slane %v1201_v6, 9  ;;  %v1177_v52 = vcombine.low %v3651_v8, %v1172_v48  ;;  %v1209_v53 = vrot.slane %v1172_v48, %v3657_v12 }
 0x20a   :  { %v1184_v54 = vrot.slane %v1176_v38, %v3657_v12  ;;  %v1408_v55 = vcombine.low %v1172_v48, %v3928_v50  ;;  %v3937_v58 = vrot.slane %v3928_v50, %v3657_v12  ;;  %v1415_v9 = vrot.slane %v1407_v36, %v3657_v12 }
 0x20b   :  { %v1213_v49 = vrot.slane %v1202_v44, 7  ;;  %v1191_v56 = vrot.slane %v1177_v52, %v3657_v12  ;;  %v1210_v57 = vcombine.high %v1209_v53, %v1209_v53  ;;  %v2867_v39 = vrot.slane %v1209_v53, 9 }
 0x20c   :  { %v1422_v2 = vrot.slane %v1408_v55, %v3657_v12  ;;  %v1491_v3 = vcombine.high %v3937_v58, %v3937_v58  ;;  %v1483_v10 = vcombine.high %v3946_v60, %v3946_v60  ;;  %v2873_v14 = vcombine.high %v3670_v22, %v1209_v53 }
 0x20d   :  { %v3941_v59 = vsel %vm3708_vm11, %v2866_v47, %v1213_v49  ;;  %v1217_v61 = vrot.slane %v1210_v57, 7  ;;  %v1192_v62 = vcombine.low %v1184_v54, %v1191_v56  ;;  %v2883_v19 = vcombine.high %v1209_v53, %v3937_v58  ;;  %v3165_v49 = vld [vmem:[#allocation10 + $0x20] sm:$0xff]   ;;  %v3166_v54 = vld [vmem:[#allocation10 + $0x38] sm:$0xff]  }
 0x20e   :  { %v1219_v1 = vcombine.low %v3732_v51, %v3941_v59  ;;  %v1498_v17 = vrot.slane %v1491_v3, 7  ;;  %v1423_v18 = vcombine.low %v1415_v9, %v1422_v2  ;;  %v2872_v21 = vcombine.high %v3670_v22, %v1201_v6  ;;  %v3168_v9 = vld [vmem:[#allocation10 + $0x40] sm:$0xff]  }
 0x20f   :  { %v1194_v4 = vpack.c.bf16 %v1192_v62, %v1192_v62  ;;  %v1218_v5 = vsel %vm3708_vm11, %v2867_v39, %v1217_v61  ;;  %v1494_v23 = vrot.slane %v1483_v10, 7  ;;  %v2879_v24 = vrot.slane %v3937_v58, 9 }
 0x210   :  { %v1220_v7 = vcombine.low %v3732_v51, %v1218_v5  ;;  %v1227_v11 = vrot.slane %v1219_v1, %v3657_v12  ;;  %v2882_v28 = vcombine.high %v1201_v6, %v3946_v60  ;;  %v1351_v31 = vrot.slane %v2873_v14, %v3657_v12  ;;  %v3167_v1 = vld [vmem:[#allocation10 + $0x30] sm:$0xff]  }
 0x211   :  { %3040 = vmatmul.mubr.msk.bf16.vlgmr.msra.gmra.mrb[20].mxu1 %vm1030_vm14, %v1194_v4  ;;  %v2878_v15 = vrot.slane %v3946_v60, 9  ;;  %v1425_v16 = vpack.c.bf16 %v1423_v18, %v1423_v18  ;;  %v1584_v34 = vrot.slane %v2883_v19, %v3657_v12  ;;  %v1499_v35 = vsel %vm3708_vm11, %v2879_v24, %v1498_v17  ;;  %v172_v17 = vld [vmem:[#allocation8] sm:$0x3]  ;;  %v174_v18 = vld [vmem:[#allocation8 + $0x4] sm:$0x3] }
 0x212   :  { %3050 = vmatpush3.bf16.msra.mxu1 %v3162_v63  ;;  %v1234_v13 = vrot.slane %v1220_v7, %v3657_v12  ;;  %3051 = vmatprep.mubr.msk.bf16.mxu1 %vm3435_vm0, %v3434_v0  ;;  %v1344_v37 = vrot.slane %v2872_v21, %v3657_v12  ;;  %v1577_v6 = vrot.slane %v2882_v28, %v3657_v12  ;;  %v2005_v21 = vrot.slane %v174_v18, 7 }
 0x213   :  { %3061 = vmatprep.subr.bf16.mxu1 %v3434_v0  ;;  %v1495_v38 = vsel %vm3708_vm11, %v2878_v15, %v1494_v23  ;;  %v1501_v42 = vcombine.low %v1218_v5, %v1499_v35  ;;  %v1708_v47 = vcombine.low %v1499_v35, %v3732_v51  ;;  %v1638_v63 = vcombine.low %v3924_v45, %v3651_v8  ;;  %v211_v23 = vld [vmem:[%s4291_s12] sm:$0x3] }
 0x214   :  { %v1235_v20 = vcombine.low %v1227_v11, %v1234_v13  ;;  %v1352_v40 = vcombine.low %v1344_v37, %v1351_v31  ;;  %v1585_v44 = vcombine.low %v1577_v6, %v1584_v34  ;;  %v1500_v48 = vcombine.low %v3941_v59, %v1495_v38  ;;  %v173_v31 = vld [vmem:[#allocation8 + $0x2] sm:$0x3]  ;;  %v175_v37 = vld [vmem:[#allocation8 + $0x6] sm:$0x3] }
 0x215   :  { %v1707_v52 = vcombine.low %v1495_v38, %v3732_v51  ;;  %v1515_v55 = vrot.slane %v1501_v42, %v3657_v12  ;;  %v1722_v57 = vrot.slane %v1708_v47, %v3657_v12  ;;  %v1639_v59 = vcombine.low %v3928_v50, %v3651_v8 }
 0x216   :  { %v1237_v43 = vpack.c.bf16 %v1235_v20, %v1235_v20  ;;  %v1354_v53 = vpack.c.bf16 %v1352_v40, %v1352_v40  ;;  %v1587_v56 = vpack.c.bf16 %v1585_v44, %v1585_v44  ;;  %v1508_v36 = vrot.slane %v1500_v48, %v3657_v12 }
 0x217   :  { %v1715_v39 = vrot.slane %v1707_v52, %v3657_v12  ;;  %v1653_v2 = vrot.slane %v1639_v59, %v3657_v12  ;;  %v1646_v4 = vrot.slane %v1638_v63, %v3657_v12  ;;  %v2891_v5 = vcombine.high %v3937_v58, %v3670_v22 }
 0x218   :  { %3034 = vmatmul.mubr.msk.bf16.vlgmr.msra.gmra.mrb[20].mxu0 %vm1030_vm14, %v1237_v43  ;;  %v1516_v61 = vcombine.low %v1508_v36, %v1515_v55  ;;  %v2890_v7 = vcombine.high %v3946_v60, %v3670_v22  ;;  %v212_v60 = vld [vmem:[%s4291_s12 + $0x2] sm:$0x3]  ;;  %v2003_v20 = vrot.slane %v172_v17, 7  ;;  %v2133_v24 = vsel %vm390_vm4, %v211_v23, 0 }
 0x219   :  { %3044 = vmatpush3.bf16.msra.mxu0 %v3163_v27  ;;  %3052 = vmatmul.mubr.msk.bf16.vlgmr.msra.gmra.mrb[24].mxu1 %vm1030_vm14, %v1425_v16  ;;  %v1723_v62 = vcombine.low %v1715_v39, %v1722_v57  ;;  %v1654_v45 = vcombine.low %v1646_v4, %v1653_v2  ;;  %v1791_v11 = vrot.slane %v2891_v5, %v3657_v12  ;;  %v2087_v19 = vsel %vm390_vm4, %v212_v60, 0 }
 0x21a   :  { %3062 = vmatpush3.bf16.msra.mxu1 %v3164_v46  ;;  %3045 = vmatprep.mubr.msk.bf16.mxu0 %vm3435_vm0, %v3434_v0  ;;  %v1518_v50 = vpack.c.bf16 %v1516_v61, %v1516_v61  ;;  %v1784_v13 = vrot.slane %v2890_v7, %v3657_v12  ;;  %v2011_v27 = vsel %vm291_vm1, 0.0, %v2003_v20  ;;  %v2013_v28 = vsel %vm291_vm1, 0.0, %v2005_v21 }
 0x21b   :  { %3055 = vmatprep.subr.bf16.mxu0 %v3434_v0  ;;  %3063 = vmatprep.mubr.msk.bf16.mxu1 %vm3435_vm0, %v3434_v0  ;;  %v1725_v3 = vpack.c.bf16 %v1723_v62, %v1723_v62  ;;  %v1656_v10 = vpack.c.bf16 %v1654_v45, %v1654_v45  ;;  %v2015_v43 = vsel %vm297_vm2, %v2011_v27, 0.0  ;;  %v2017_v46 = vsel %vm297_vm2, %v2013_v28, 0.0 }
 0x21c   :  { %3073 = vmatprep.subr.bf16.mxu1 %v3434_v0  ;;  %v1792_v14 = vcombine.low %v1784_v13, %v1791_v11  ;;  %v2046_v15 = vrot.slane %v2015_v43, %v3657_v12  ;;  %v2054_v16 = vrot.slane %v2017_v46, %v3657_v12  ;;  %v2021_v34 = vcombine.low %v3651_v8, %v2015_v43 }
 0x21d   :  { %v2022_v35 = vcombine.low %v3651_v8, %v2017_v46  ;;  %v2004_v6 = vrot.slane %v173_v31, 7  ;;  %v2006_v38 = vrot.slane %v175_v37, 7 }
 0x21e   :  { %v1794_v58 = vpack.c.bf16 %v1792_v14, %v1792_v14  ;;  %v2047_v40 = vcombine.high %v2046_v15, %v2046_v15  ;;  %v2055_v42 = vcombine.high %v2054_v16, %v2054_v16  ;;  %v2895_v44 = vrot.slane %v2046_v15, 9 }
 0x21f   :  { %v2896_v47 = vrot.slane %v2054_v16, 9  ;;  %v2029_v48 = vrot.slane %v2021_v34, %v3657_v12  ;;  %v2012_v55 = vsel %vm291_vm1, 0.0, %v2004_v6  ;;  %v2899_v36 = vcombine.high %v3670_v22, %v2046_v15 }
 0x220   :  { %3046 = vmatmul.mubr.msk.bf16.vlgmr.msra.gmra.mrb[24].mxu0 %vm1030_vm14, %v1354_v53  ;;  %v2058_v52 = vrot.slane %v2047_v40, 7  ;;  %v2062_v53 = vrot.slane %v2055_v42, 7  ;;  %v2900_v39 = vcombine.high %v3670_v22, %v2054_v16  ;;  %v4056_v59 = vsel %vm297_vm2, %v2012_v55, 0.0  ;;  %v218_v55 = vld [vmem:[%s4291_s12 + $0xe] sm:$0x3] }
 0x221   :  { %3056 = vmatpush3.bf16.msra.mxu0 %v3165_v49  ;;  %3064 = vmatmul.mubr.msk.bf16.vlgmr.msra.gmra.mrb[28].mxu1 %vm1030_vm14, %v1587_v56  ;;  %v2036_v49 = vrot.slane %v2022_v35, %v3657_v12  ;;  %v2014_v56 = vsel %vm291_vm1, 0.0, %v2006_v38  ;;  %v4073_v7 = vrot.slane %v4056_v59, %v3657_v12  ;;  %v2183_v13 = vrot.slane %v2899_v36, %v3657_v12 }
 0x222   :  { %3074 = vmatpush3.bf16.msra.mxu1 %v3166_v54  ;;  %3057 = vmatprep.mubr.msk.bf16.mxu0 %vm3435_vm0, %v3434_v0  ;;  %v214_v54 = vld [vmem:[%s4291_s12 + $0x6] sm:$0x3]  ;;  %v2059_v61 = vsel %vm3708_vm11, %v2895_v44, %v2058_v52  ;;  %v2063_v62 = vsel %vm3708_vm11, %v2896_v47, %v2062_v53  ;;  %v4063_v63 = vsel %vm297_vm2, %v2014_v56, 0.0  ;;  %v2190_v14 = vrot.slane %v2900_v39, %v3657_v12 }
 0x223   :  { %3067 = vmatprep.subr.bf16.mxu0 %v3434_v0  ;;  %3075 = vmatprep.mubr.msk.bf16.mxu1 %vm3435_vm0, %v3434_v0  ;;  %v2037_v57 = vcombine.low %v2029_v48, %v2036_v49  ;;  %v2064_v2 = vcombine.low %v3732_v51, %v2059_v61  ;;  %v2266_v4 = vsel %vm390_vm4, %v214_v54, 0  ;;  %v2244_v45 = vcombine.low %v2017_v46, %v4063_v63  ;;  %v216_v46 = vld [vmem:[%s4291_s12 + $0xa] sm:$0x3]  ;;  %v215_v49 = vld [vmem:[%s4291_s12 + $0x8] sm:$0x3] }
 0x224   :  { %3085 = vmatprep.subr.bf16.mxu1 %v3434_v0  ;;  %v2316_v17 = vcombine.high %v4073_v7, %v4073_v7  ;;  %v2906_v23 = vcombine.high %v2046_v15, %v4073_v7  ;;  %v2191_v38 = vcombine.low %v2183_v13, %v2190_v14  ;;  %v2422_v44 = vsel %vm390_vm4, %v216_v46, 0 }
 0x225   :  { %v2258_v60 = vrot.slane %v2244_v45, %v3657_v12 }
 0x226   :  { %v2327_v28 = vrot.slane %v2316_v17, 7  ;;  %v2407_v35 = vrot.slane %v2906_v23, %v3657_v12  ;;  %v2193_v52 = vpack.c.bf16 %v2191_v38, %v2191_v38 }
 0x228   :  { %3058 = vmatmul.mubr.msk.bf16.vlgmr.msra.gmra.mrb[28].mxu0 %vm1030_vm14, %v1518_v50  ;;  %v2065_v50 = vcombine.low %v3732_v51, %v2063_v62 }
 0x229   :  { %3068 = vmatpush3.bf16.msra.mxu0 %v3167_v1  ;;  %3076 = vmatmul.mubr.msk.bf16.vlgmr.msra.gmra.mrb[32].mxu1 %vm1030_vm14, %v1725_v3  ;;  %v2243_v1 = vcombine.low %v2015_v43, %v4056_v59  ;;  %v2039_v3 = vpack.c.bf16 %v2037_v57, %v2037_v57 }
 0x22a   :  { %3069 = vmatprep.mubr.msk.bf16.mxu0 %vm3435_vm0, %v3434_v0  ;;  %3079 = vmatprep.subr.bf16.mxu0 %v3434_v0  ;;  %v2079_v11 = vrot.slane %v2065_v50, %v3657_v12  ;;  %v217_v50 = vld [vmem:[%s4291_s12 + $0xc] sm:$0x3] }
 0x22b   :  { %3087 = vmatprep.mubr.msk.bf16.mxu1 %vm3435_vm0, %v3434_v0  ;;  %3086 = vmatpush3.bf16.msra.mxu1 %v2087_v19  ;;  %v2251_v5 = vrot.slane %v2243_v1, %v3657_v12  ;;  %v2903_v19 = vrot.slane %v4073_v7, 9  ;;  %v2554_v1 = vsel %vm390_vm4, %v218_v55, 0 }
 0x22c   :  { %3097 = vmatprep.subr.bf16.mxu1 %v3434_v0 }
 0x22d   :  { %v2259_v27 = vcombine.low %v2251_v5, %v2258_v60  ;;  %v2328_v15 = vsel %vm3708_vm11, %v2903_v19, %v2327_v28  ;;  %v2911_v5 = vcombine.high %v4073_v7, %v3670_v22 }
 0x22e   :  { %v2333_v40 = vcombine.low %v2059_v61, %v2328_v15  ;;  %v2531_v48 = vcombine.low %v2328_v15, %v3732_v51  ;;  %v2465_v61 = vcombine.low %v4056_v59, %v3651_v8 }
 0x22f   :  { %v2261_v6 = vpack.c.bf16 %v2259_v27, %v2259_v27  ;;  %v2605_v14 = vrot.slane %v2911_v5, %v3657_v12 }
 0x230   :  { %3070 = vmatmul.mubr.msk.bf16.vlgmr.msra.gmra.mrb[32].mxu0 %vm1030_vm14, %v1656_v10  ;;  %v2072_v10 = vrot.slane %v2064_v2, %v3657_v12  ;;  %v2341_v53 = vrot.slane %v2333_v40, %v3657_v12  ;;  %v2539_v57 = vrot.slane %v2531_v48, %v3657_v12  ;;  %v2473_v59 = vrot.slane %v2465_v61, %v3657_v12 }
 0x231   :  { %3080 = vmatpush3.bf16.msra.mxu0 %v3168_v9  ;;  %3081 = vmatprep.mubr.msk.bf16.mxu0 %vm3435_vm0, %v3434_v0  ;;  %v4077_v9 = vrot.slane %v4063_v63, %v3657_v12 }
 0x232   :  { %3091 = vmatprep.subr.bf16.mxu0 %v3434_v0  ;;  %v2080_v20 = vcombine.low %v2072_v10, %v2079_v11  ;;  %v219_v11 = vld [vmem:[%s4291_s12 + $0x10] sm:$0x3] }
 0x233   :  { %v2324_v18 = vcombine.high %v4077_v9, %v4077_v9  ;;  %v2904_v21 = vrot.slane %v4077_v9, 9  ;;  %v2912_v10 = vcombine.high %v4077_v9, %v3670_v22 }
 0x234   :  { %v2082_v31 = vpack.c.bf16 %v2080_v20, %v2080_v20 }
 0x235   :  { %v2331_v43 = vrot.slane %v2324_v18, 7  ;;  %v2612_v7 = vrot.slane %v2912_v10, %v3657_v12 }
 0x236   :  { %3088 = vmatmul.mubr.msk.bf16.vlgmr.msra.gmra.mrb[36].mxu1 %vm386_vm12, %v2082_v31 }
 0x237   :  { %3099 = vmatprep.mubr.msk.bf16.mxu1 %vm3435_vm0, %v3434_v0  ;;  %v2613_v22 = vcombine.low %v2605_v14, %v2612_v7 }
 0x238   :  { %3082 = vmatmul.mubr.msk.bf16.vlgmr.msra.gmra.mrb[36].mxu0 %vm1030_vm14, %v1794_v58  ;;  %v213_v58 = vld [vmem:[%s4291_s12 + $0x4] sm:$0x3] }
 0x239   :  { %3093 = vmatprep.mubr.msk.bf16.mxu0 %vm3435_vm0, %v3434_v0  ;;  %3092 = vmatpush3.bf16.msra.mxu0 %v2133_v24  ;;  %v2907_v24 = vcombine.high %v2054_v16, %v4077_v9  ;;  %v2198_v34 = vsel %vm390_vm4, %v213_v58, 0  ;;  %v2332_v16 = vsel %vm3708_vm11, %v2904_v21, %v2331_v43  ;;  %v2620_v58 = vsel %vm390_vm4, %v219_v11, 0 }
 0x23a   :  { %3103 = vmatprep.subr.bf16.mxu0 %v3434_v0  ;;  %v2334_v42 = vcombine.low %v2063_v62, %v2332_v16  ;;  %3098 = vmatpush3.bf16.msra.mxu1 %v2198_v34  ;;  %v2532_v41 = vcombine.low %v2332_v16, %v3732_v51  ;;  %v2356_v51 = vsel %vm390_vm4, %v215_v49, 0  ;;  %v2466_v62 = vcombine.low %v4063_v63, %v3651_v8 }
 0x23b   :  { %v2414_v37 = vrot.slane %v2907_v24, %v3657_v12  ;;  %3109 = vmatprep.subr.bf16.mxu1 %v3434_v0  ;;  %v2615_v9 = vpack.c.bf16 %v2613_v22, %v2613_v22 }
 0x23c   :  { %v2348_v54 = vrot.slane %v2334_v42, %v3657_v12  ;;  %v2546_v36 = vrot.slane %v2532_v41, %v3657_v12  ;;  %v2480_v63 = vrot.slane %v2466_v62, %v3657_v12 }
 0x23d   :  { %v2415_v47 = vcombine.low %v2407_v35, %v2414_v37 }
 0x23e   :  { %3100 = vmatmul.mubr.msk.bf16.vlgmr.msra.gmra.mrb[40].mxu1 %vm386_vm12, %v2193_v52  ;;  %v2349_v39 = vcombine.low %v2341_v53, %v2348_v54  ;;  %v2547_v2 = vcombine.low %v2539_v57, %v2546_v36  ;;  %v2481_v45 = vcombine.low %v2473_v59, %v2480_v63 }
 0x23f   :  { %v2417_v56 = vpack.c.bf16 %v2415_v47, %v2415_v47  ;;  %3110 = vmatpush3.bf16.msra.mxu1 %v2356_v51  ;;  %3111 = vmatprep.mubr.msk.bf16.mxu1 %vm3435_vm0, %v3434_v0 }
 0x240   :  { %3094 = vmatmul.mubr.msk.bf16.vlgmr.msra.gmra.mrb[40].mxu0 %vm386_vm12, %v2039_v3  ;;  %3121 = vmatprep.subr.bf16.mxu1 %v3434_v0  ;;  %v2351_v8 = vpack.c.bf16 %v2349_v39, %v2349_v39  ;;  %v2488_v3 = vsel %vm390_vm4, %v217_v50, 0  ;;  %v2483_v13 = vpack.c.bf16 %v2481_v45, %v2481_v45 }
 0x241   :  { %3104 = vmatpush3.bf16.msra.mxu0 %v2266_v4  ;;  %3105 = vmatprep.mubr.msk.bf16.mxu0 %vm3435_vm0, %v3434_v0  ;;  %v2549_v4 = vpack.c.bf16 %v2547_v2, %v2547_v2 }
 0x242   :  { %3115 = vmatprep.subr.bf16.mxu0 %v3434_v0 }
 0x246   :  { %3112 = vmatmul.mubr.msk.bf16.vlgmr.msra.gmra.mrb[44].mxu1 %vm386_vm12, %v2351_v8 }
 0x247   :  { %3122 = vmatpush3.bf16.msra.mxu1 %v2488_v3  ;;  %3123 = vmatprep.mubr.msk.bf16.mxu1 %vm3435_vm0, %v3434_v0 }
 0x248   :  { %3106 = vmatmul.mubr.msk.bf16.vlgmr.msra.gmra.mrb[44].mxu0 %vm386_vm12, %v2261_v6  ;;  %3133 = vmatprep.subr.bf16.mxu1 %v3434_v0 }
 0x249   :  { %3116 = vmatpush3.bf16.msra.mxu0 %v2422_v44  ;;  %3117 = vmatprep.mubr.msk.bf16.mxu0 %vm3435_vm0, %v3434_v0 }
 0x24a   :  { %3127 = vmatprep.subr.bf16.mxu0 %v3434_v0 }
 0x24e   :  { %3124 = vmatmul.mubr.msk.bf16.vlgmr.msra.gmra.mrb[48].mxu1 %vm386_vm12, %v2483_v13 }
 0x24f   :  { %3134 = vmatpush3.bf16.msra.mxu1 %v2620_v58  ;;  %3135 = vmatprep.mubr.msk.bf16.mxu1 %vm3435_vm0, %v3434_v0 }
 0x250   :  { %3118 = vmatmul.mubr.msk.bf16.vlgmr.msra.gmra.mrb[48].mxu0 %vm386_vm12, %v2417_v56 }
 0x251   :  { %3128 = vmatpush3.bf16.msra.mxu0 %v2554_v1  ;;  %3129 = vmatprep.mubr.msk.bf16.mxu0 %vm3435_vm0, %v3434_v0  ;;  %v2894_v1 = vld [vmem:[%s4284_s5] ss:$0 sm:$0xff]  ;;  %s3439_s5 = smov 96  }
 0x256   :  { %3136 = vmatmul.mubr.msk.bf16.vlgmr.msra.gmra.mrb[52].mxu1 %vm386_vm12, %v2615_v9 }
 0x258   :  { %3130 = vmatmul.mubr.msk.bf16.vlgmr.msra.gmra.mrb[52].mxu0 %vm386_vm12, %v2549_v4 }
 0x2e4   :  { %v1330_v60 = vpop.f32.mrb[20].mxu1 }
 0x2e5   :  { %v3041_v17 = vpop.f32.mrb[21].mxu1 }
 0x2e6   :  { %v1333_v18 = vpop.f32.mrb[22].mxu1 }
 0x2e7   :  { %v3042_v19 = vpop.f32.mrb[23].mxu1 }
 0x2eb   :  { %v1281_v20 = vpop.f32.mrb[20].mxu0 }
 0x2ec   :  { %v1331_v21 = vadd.f32 %v1330_v60, %v1281_v20  ;;  %v3035_v23 = vpop.f32.mrb[21].mxu0  ;;  %v1469_v24 = vpop.f32.mrb[24].mxu1 }
 0x2ed   :  { %v1284_v27 = vpop.f32.mrb[22].mxu0  ;;  %v3053_v28 = vpop.f32.mrb[25].mxu1 }
 0x2ee   :  { %v3036_v43 = vpop.f32.mrb[23].mxu0  ;;  %v1472_v46 = vpop.f32.mrb[26].mxu1 }
 0x2ef   :  { %v3054_v31 = vpop.f32.mrb[27].mxu1 }
 0x2f3   :  { %v1398_v34 = vpop.f32.mrb[24].mxu0 }
 0x2f4   :  { %v1404_v35 = vadd.f32 %v1398_v34, %v1331_v21  ;;  %v3047_v37 = vpop.f32.mrb[25].mxu0  ;;  %v1631_v0 = vpop.f32.mrb[28].mxu1 }
 0x2f5   :  { %v1401_v6 = vpop.f32.mrb[26].mxu0  ;;  %v3065_v15 = vpop.f32.mrb[29].mxu1 }
 0x2f6   :  { %v3048_v16 = vpop.f32.mrb[27].mxu0  ;;  %v1634_v38 = vpop.f32.mrb[30].mxu1  ;;  %v1475_v40 = vadd.f32 %v1469_v24, %v1404_v35 }
 0x2f7   :  { %v3066_v42 = vpop.f32.mrb[31].mxu1 }
 0x2fb   :  { %v1562_v44 = vpop.f32.mrb[28].mxu0 }
 0x2fc   :  { %v1568_v47 = vadd.f32 %v1562_v44, %v1475_v40  ;;  %v3059_v48 = vpop.f32.mrb[29].mxu0  ;;  %v1769_v41 = vpop.f32.mrb[32].mxu1 }
 0x2fd   :  { %v1565_v49 = vpop.f32.mrb[30].mxu0  ;;  %v3077_v52 = vpop.f32.mrb[33].mxu1 }
 0x2fe   :  { %v3060_v53 = vpop.f32.mrb[31].mxu0  ;;  %v1772_v54 = vpop.f32.mrb[34].mxu1  ;;  %v1637_v55 = vadd.f32 %v1631_v0, %v1568_v47 }
 0x2ff   :  { %v3078_v51 = vpop.f32.mrb[35].mxu1 }
 0x303   :  { %v1700_v56 = vpop.f32.mrb[32].mxu0 }
 0x304   :  { %v1706_v57 = vadd.f32 %v1700_v56, %v1637_v55  ;;  %v3071_v36 = vpop.f32.mrb[33].mxu0 }
 0x305   :  { %v1703_v39 = vpop.f32.mrb[34].mxu0 }
 0x306   :  { %v3072_v61 = vpop.f32.mrb[35].mxu0  ;;  %v1775_v62 = vadd.f32 %v1769_v41, %v1706_v57 }
 0x30b   :  { %v1838_v2 = vpop.f32.mrb[36].mxu0 }
 0x30c   :  { %v1844_v50 = vadd.f32 %v1838_v2, %v1775_v62  ;;  %v3083_v8 = vpop.f32.mrb[37].mxu0 }
 0x30d   :  { %v1841_v59 = vpop.f32.mrb[38].mxu0 }
 0x30e   :  { %v1851_v63 = vadd.f32 %v2894_v1, %v1844_v50  ;;  %v3084_v3 = vpop.f32.mrb[39].mxu0 }
 0x310   :  { %v1853_v4 = vcombine.high %v1851_v63, %v1851_v63  ;;  %v1860_v45 = vrot.slane %v1851_v63, %v3657_v12 }
 0x312   :  { %v1874_v5 = vsel %vm1001_vm13, %v1860_v45, 0.0  ;;  %v1867_v10 = vrot.slane %v1853_v4, %v3657_v12  ;;  %v1868_v11 = vcombine.high %v1860_v45, %v1860_v45  ;;  %v2123_v4 = vpop.f32.mrb[36].mxu1 }
 0x313   :  { %1875 = vadd.xlane.f32.xlu1 %v1874_v5 }
 0x314   :  { %v1880_v13 = vsel %vm1001_vm13, %v1867_v10, 0.0  ;;  %v1877_v14 = vsel %vm1001_vm13, %v1868_v11, 0.0  ;;  %v1869_v7 = vcombine.high %v1867_v10, %v1867_v10 }
 0x315   :  { %1881 = vadd.xlane.f32.xlu0 %v1880_v13 }
 0x316   :  { %v1883_v58 = vsel %vm1001_vm13, %v1869_v7, 0.0 }
 0x317   :  { %1878 = vadd.xlane.f32.xlu1 %v1877_v14 }
 0x31b   :  { %1884 = vadd.xlane.f32.xlu1 %v1883_v58 }
 0x32b   :  { %2800 = vrot.lane.b32.xlu0 %v3853_v30, %s3439_s5 }
 0x3a0   :  { %v1876_v22 = vpop.xlane.xlu1 %1875 }
 0x3a1   :  { %v1886_v9 = vsel %vm390_vm4, %v1876_v22, 0.0 }
 0x3a2   :  { %v1887_v60 = vrot.slane %v1886_v9, 4  ;;  %v1882_v17 = vpop.xlane.xlu0 %1881 }
 0x3a3   :  { %v1900_v18 = vsel %vm390_vm4, %v1882_v17, 0.0 }
 0x3a4   :  { %v1888_v19 = vadd.f32 %v1887_v60, %v1886_v9  ;;  %v1901_v20 = vrot.slane %v1900_v18, 4  ;;  %v1879_v21 = vpop.xlane.xlu1 %1878 }
 0x3a5   :  { %v1893_v23 = vsel %vm390_vm4, %v1879_v21, 0.0 }
 0x3a6   :  { %v1889_v24 = vrot.slane %v1888_v19, 2  ;;  %v1902_v27 = vadd.f32 %v1901_v20, %v1900_v18  ;;  %v1894_v28 = vrot.slane %v1893_v23, 4 }
 0x3a8   :  { %v1890_v43 = vadd.f32 %v1889_v24, %v1888_v19  ;;  %v1903_v46 = vrot.slane %v1902_v27, 2  ;;  %v1895_v31 = vadd.f32 %v1894_v28, %v1893_v23  ;;  %v1885_v34 = vpop.xlane.xlu1 %1884 }
 0x3a9   :  { %v1907_v35 = vsel %vm390_vm4, %v1885_v34, 0.0 }
 0x3aa   :  { %v1896_v37 = vrot.slane %v1895_v31, 2  ;;  %v1908_v0 = vrot.slane %v1907_v35, 4  ;;  %v1891_v6 = vrot.slane %v1890_v43, 1  ;;  %v1904_v15 = vadd.f32 %v1903_v46, %v1902_v27 }
 0x3ac   :  { %v1897_v16 = vadd.f32 %v1896_v37, %v1895_v31  ;;  %v1909_v38 = vadd.f32 %v1908_v0, %v1907_v35  ;;  %v1892_v44 = vadd.f32 %v1891_v6, %v1890_v43  ;;  %v1905_v47 = vrot.slane %v1904_v15, 1 }
 0x3ae   :  { %v1898_v40 = vrot.slane %v1897_v16, 1  ;;  %v1910_v42 = vrot.slane %v1909_v38, 2  ;;  %v1906_v53 = vadd.f32 %v1905_v47, %v1904_v15 }
 0x3b0   :  { %v1899_v48 = vadd.f32 %v1898_v40, %v1897_v16  ;;  %v1911_v41 = vadd.f32 %v1910_v42, %v1909_v38 }
 0x3b2   :  { %v1912_v49 = vrot.slane %v1911_v41, 1  ;;  %v1914_v52 = vadd.f32 %v1899_v48, %v1892_v44 }
 0x3b4   :  { %v1913_v54 = vadd.f32 %v1912_v49, %v1911_v41  ;;  %v1917_v55 = vmul.f32 0.015625, %v1914_v52 }
 0x3b6   :  { %v4183_v51 = vsub.f32 %v1860_v45, %v1917_v55  ;;  %v4185_v56 = vsub.f32 %v1868_v11, %v1917_v55  ;;  %v1915_v57 = vadd.f32 %v1913_v54, %v1906_v53  ;;  %v3089_v45 = vpop.f32.mrb[37].mxu1 }
 0x3b7   :  { %v2126_v5 = vpop.f32.mrb[38].mxu1 }
 0x3b8   :  { %v1923_v36 = vmul.f32 %v4183_v51, %v4183_v51  ;;  %v1918_v39 = vmul.f32 0.015625, %v1915_v57  ;;  %v1924_v62 = vmul.f32 %v4185_v56, %v4185_v56  ;;  %v3090_v13 = vpop.f32.mrb[39].mxu1 }
 0x3b9   :  { %v2234_v58 = vpop.f32.mrb[40].mxu1 }
 0x3ba   :  { %v1927_v61 = vsel %vm1001_vm13, %v1923_v36, 0.0  ;;  %v4192_v1 = vsub.f32 %v1867_v10, %v1918_v39  ;;  %v1930_v2 = vsel %vm1001_vm13, %v1924_v62, 0.0  ;;  %v4197_v8 = vsub.f32 %v1869_v7, %v1918_v39  ;;  %v2169_v10 = vpop.f32.mrb[40].mxu0  ;;  %v3101_v60 = vpop.f32.mrb[41].mxu1 }
 0x3bb   :  { %1928 = vadd.xlane.f32.xlu1 %v1927_v61  ;;  %v2170_v11 = vadd.f32 %v2169_v10, %v2123_v4  ;;  %v3095_v14 = vpop.f32.mrb[41].mxu0  ;;  %v2237_v18 = vpop.f32.mrb[42].mxu1 }
 0x3bc   :  { %v1925_v50 = vmul.f32 %v4192_v1, %v4192_v1  ;;  %v1926_v63 = vmul.f32 %v4197_v8, %v4197_v8  ;;  %v2172_v7 = vpop.f32.mrb[42].mxu0  ;;  %v3102_v20 = vpop.f32.mrb[43].mxu1 }
 0x3bd   :  { %v3096_v22 = vpop.f32.mrb[43].mxu0  ;;  %v2240_v9 = vadd.f32 %v2234_v58, %v2170_v11  ;;  %v2392_v23 = vpop.f32.mrb[44].mxu1 }
 0x3be   :  { %v1933_v59 = vsel %vm1001_vm13, %v1925_v50, 0.0  ;;  %v1936_v3 = vsel %vm1001_vm13, %v1926_v63, 0.0  ;;  %v2302_v17 = vpop.f32.mrb[44].mxu0 }
 0x3bf   :  { %1931 = vadd.xlane.f32.xlu1 %v1930_v2  ;;  %v2308_v19 = vadd.f32 %v2302_v17, %v2240_v9  ;;  %v3107_v21 = vpop.f32.mrb[45].mxu0 }
 0x3c1   :  { %v2398_v24 = vadd.f32 %v2392_v23, %v2308_v19 }
 0x3c3   :  { %1934 = vadd.xlane.f32.xlu1 %v1933_v59 }
 0x3c7   :  { %1937 = vadd.xlane.f32.xlu1 %v1936_v3 }
 0x3d8   :  { %2798 = vrot.lane.b32.xlu1 %v3851_v29, %s3439_s5 }
 0x3dc   :  { %2808 = vrot.lane.b32.xlu1 %v3851_v29, %s3440_s2  ;;  %v2305_v29 = vpop.f32.mrb[46].mxu0 }
 0x3dd   :  { %v3108_v27 = vpop.f32.mrb[47].mxu0 }
 0x3de   :  { %v2458_v28 = vpop.f32.mrb[48].mxu0 }
 0x3df   :  { %v2464_v46 = vadd.f32 %v2458_v28, %v2398_v24  ;;  %v3119_v34 = vpop.f32.mrb[49].mxu0 }
 0x3e0   :  { %2810 = vrot.lane.b32.xlu1 %v3853_v30, %s3440_s2  ;;  %v3113_v30 = vpop.f32.mrb[45].mxu1  ;;  %v2461_v35 = vpop.f32.mrb[50].mxu0 }
 0x3e1   :  { %v2395_v43 = vpop.f32.mrb[46].mxu1  ;;  %v3120_v6 = vpop.f32.mrb[51].mxu0  ;;  %v2914_v35 = vld [vmem:[%s4292_s13] ss:$0 sm:$0xff]  ;;  %s3441_s13 = smov [#allocation17]  }
 0x3e2   :  { %v3114_v31 = vpop.f32.mrb[47].mxu1  ;;  %v2590_v16 = vpop.f32.mrb[52].mxu0  ;;  %v196_v6 = vld [vmem:[#allocation11 + $0x2] sm:$0x3]  ;;  %s2827_s10 = sshll.u32 %s3441_s13, 4  ;;  %s2828_s10 = int_to_ptr.vmem [resolvable:$true] %s2827_s10 }
 0x3e3   :  { %v2524_v37 = vpop.f32.mrb[48].mxu1  ;;  %v3131_v44 = vpop.f32.mrb[53].mxu0  ;;  %s3387_s17 = scalar_lea.vmem %s2828_s10, 128  ;;  %p3392_p3 = scmp.lt.s32.totalorder %s2828_s10, %s2828_s10 }
 0x3e4   :  { %v2530_v0 = vadd.f32 %v2524_v37, %v2464_v46  ;;  %v3125_v15 = vpop.f32.mrb[49].mxu1  ;;  %v2593_v48 = vpop.f32.mrb[54].mxu0  ;;  %p3388_p2 = scmp.ne.s32.totalorder %s2828_s10, %s3387_s17  ;;  %p3393_p4 = scmp.lt.s32.totalorder %s3387_s17, %s3387_s17 }
 0x3e5   :  { %v2527_v38 = vpop.f32.mrb[50].mxu1  ;;  %v3132_v49 = vpop.f32.mrb[55].mxu0 }
 0x3e6   :  { %v2596_v40 = vadd.f32 %v2590_v16, %v2530_v0  ;;  %v3126_v42 = vpop.f32.mrb[51].mxu1  ;;  %v195_v0 = vld [vmem:[#allocation11] sm:$0x3]  ;;  %v197_v38 = vld [vmem:[#allocation13] sm:$0x3]  ;;  %p3394_p5 = por %p3393_p4, %p3392_p3 }
 0x3e7   :  { %v2656_v47 = vpop.f32.mrb[52].mxu1 }
 0x3e8   :  { %v2662_v41 = vadd.f32 %v2656_v47, %v2596_v40  ;;  %v3137_v52 = vpop.f32.mrb[53].mxu1  ;;  %v198_v40 = vld [vmem:[#allocation13 + $0x2] sm:$0x3]  ;;  %p3395_p6 = pnand %p3394_p5, %p3388_p2 }
 0x3e9   :  { %v2659_v53 = vpop.f32.mrb[54].mxu1 }
 0x3ea   :  { %v3138_v54 = vpop.f32.mrb[55].mxu1  ;;  %v2669_v42 = vadd.f32 %v2914_v35, %v2662_v41 }
 0x3ec   :  { %v2678_v52 = vrot.slane %v2669_v42, %v3657_v12 }
 0x448   :  { %v1929_v55 = vpop.xlane.xlu1 %1928 }
 0x449   :  { %v1939_v57 = vsel %vm390_vm4, %v1929_v55, 0.0 }
 0x44a   :  { %v1940_v36 = vrot.slane %v1939_v57, 4 }
 0x44c   :  { %v1941_v39 = vadd.f32 %v1940_v36, %v1939_v57  ;;  %v1932_v61 = vpop.xlane.xlu1 %1931 }
 0x44d   :  { %v1946_v62 = vsel %vm390_vm4, %v1932_v61, 0.0  ;;  %v2671_v61 = vcombine.high %v2669_v42, %v2669_v42 }
 0x44e   :  { %v1942_v2 = vrot.slane %v1941_v39, 2  ;;  %v1947_v50 = vrot.slane %v1946_v62, 4 }
 0x450   :  { %v1943_v59 = vadd.f32 %v1942_v2, %v1941_v39  ;;  %v1948_v63 = vadd.f32 %v1947_v50, %v1946_v62  ;;  %v1935_v3 = vpop.xlane.xlu1 %1934 }
 0x451   :  { %v1953_v4 = vsel %vm390_vm4, %v1935_v3, 0.0 }
 0x452   :  { %v1949_v45 = vrot.slane %v1948_v63, 2  ;;  %v1954_v5 = vrot.slane %v1953_v4, 4  ;;  %v1944_v10 = vrot.slane %v1943_v59, 1 }
 0x454   :  { %v1950_v11 = vadd.f32 %v1949_v45, %v1948_v63  ;;  %v1955_v13 = vadd.f32 %v1954_v5, %v1953_v4  ;;  %v1938_v14 = vpop.xlane.xlu1 %1937  ;;  %v1945_v60 = vadd.f32 %v1944_v10, %v1943_v59  ;;  %v2685_v45 = vrot.slane %v2671_v61, %v3657_v12 }
 0x455   :  { %v1960_v7 = vsel %vm390_vm4, %v1938_v14, 0.0 }
 0x456   :  { %v1951_v58 = vrot.slane %v1950_v11, 1  ;;  %v1956_v22 = vrot.slane %v1955_v13, 2  ;;  %v1961_v9 = vrot.slane %v1960_v7, 4 }
 0x458   :  { %v1952_v17 = vadd.f32 %v1951_v58, %v1950_v11  ;;  %v1957_v18 = vadd.f32 %v1956_v22, %v1955_v13  ;;  %v1962_v19 = vadd.f32 %v1961_v9, %v1960_v7  ;;  %v2687_v9 = vcombine.high %v2685_v45, %v2685_v45 }
 0x45a   :  { %v1967_v20 = vadd.f32 %v1952_v17, %v1945_v60  ;;  %v1963_v21 = vrot.slane %v1962_v19, 2  ;;  %v1958_v23 = vrot.slane %v1957_v18, 1 }
 0x45c   :  { %v1969_v29 = vmul.f32 0.015625, %v1967_v20  ;;  %v1964_v24 = vadd.f32 %v1963_v21, %v1962_v19  ;;  %v1959_v28 = vadd.f32 %v1958_v23, %v1957_v18 }
 0x45e   :  { %v1971_v27 = vadd.f32 1e-05, %v1969_v29  ;;  %v1965_v30 = vrot.slane %v1964_v24, 1 }
 0x460   :  { %3177 = vrsqrt.f32 %v1971_v27  ;;  %v1966_v43 = vadd.f32 %v1965_v30, %v1964_v24 }
 0x462   :  { %v1968_v46 = vadd.f32 %v1966_v43, %v1959_v28 }
 0x464   :  { %v1970_v31 = vmul.f32 0.015625, %v1968_v46 }
 0x466   :  { %v1972_v34 = vadd.f32 1e-05, %v1970_v31 }
 0x468   :  { %3179 = vrsqrt.f32 %v1972_v34 }
 0x46a   :  { %v3178_v37 = vpop.eup %3177 }
 0x46b   :  { %v1975_v15 = vmul.f32 %v3178_v37, %v4183_v51  ;;  %v1976_v16 = vmul.f32 %v3178_v37, %v4185_v56  ;;  %v2686_v56 = vcombine.high %v2678_v52, %v2678_v52 }
 0x46d   :  { %v1979_v44 = vmul.f32 %v1975_v15, %v195_v0  ;;  %v1980_v47 = vmul.f32 %v1976_v16, %v196_v6 }
 0x46f   :  { %v1983_v48 = vadd.f32 %v1979_v44, %v197_v38  ;;  %v1984_v49 = vadd.f32 %v1980_v47, %v198_v40 }
 0x471   :  { %v1987_v53 = vmul.f32 0.01, %v1983_v48  ;;  %v1988_v54 = vmul.f32 0.01, %v1984_v49 }
 0x472   :  { %v3180_v55 = vpop.eup %3179 }
 0x473   :  { %v1978_v57 = vmul.f32 %v3180_v55, %v4197_v8  ;;  %v1977_v36 = vmul.f32 %v3180_v55, %v4192_v1  ;;  %v1991_v39 = vmax.f32 %v1983_v48, %v1987_v53  ;;  %v1992_v51 = vmax.f32 %v1984_v49, %v1988_v54 }
 0x475   :  { %v1981_v62 = vmul.f32 %v1977_v36, %v195_v0  ;;  %v1982_v2 = vmul.f32 %v1978_v57, %v196_v6  ;;  %v1995_v41 = vadd.f32 %v1991_v39, %v3902_v25  ;;  %v1996_v50 = vadd.f32 %v1992_v51, %v3904_v26 }
 0x477   :  { %v1985_v59 = vadd.f32 %v1981_v62, %v197_v38  ;;  %v1986_v63 = vadd.f32 %v1982_v2, %v198_v40  ;;  %v2692_v3 = vadd.f32 %v2678_v52, %v1995_v41  ;;  %v2693_v4 = vadd.f32 %v2686_v56, %v1996_v50 }
 0x479   :  { %v1989_v5 = vmul.f32 0.01, %v1985_v59  ;;  %v1990_v8 = vmul.f32 0.01, %v1986_v63  ;;  %v2696_v1 = vsel %vm1001_vm13, %v2692_v3, 0.0  ;;  %v2703_v10 = vsel %vm1001_vm13, %v2693_v4, 0.0 }
 0x47a   :  { %v2697_v11 = vrot.slane %v2696_v1, 4  ;;  %v2704_v13 = vrot.slane %v2703_v10, 4 }
 0x47b   :  { %v1993_v14 = vmax.f32 %v1985_v59, %v1989_v5  ;;  %v1994_v7 = vmax.f32 %v1986_v63, %v1990_v8 }
 0x47c   :  { %v2698_v58 = vadd.f32 %v2697_v11, %v2696_v1  ;;  %v2705_v25 = vadd.f32 %v2704_v13, %v2703_v10 }
 0x47d   :  { %v1997_v26 = vadd.f32 %v1993_v14, %v3910_v32  ;;  %v1998_v22 = vadd.f32 %v1994_v7, %v3912_v33 }
 0x47e   :  { %v2699_v60 = vrot.slane %v2698_v58, 2  ;;  %v2706_v17 = vrot.slane %v2705_v25, 2 }
 0x47f   :  { %v2694_v12 = vadd.f32 %v2685_v45, %v1997_v26  ;;  %v2695_v18 = vadd.f32 %v2687_v9, %v1998_v22 }
 0x480   :  { %v2700_v19 = vadd.f32 %v2699_v60, %v2698_v58  ;;  %v2707_v20 = vadd.f32 %v2706_v17, %v2705_v25 }
 0x481   :  { %v2710_v21 = vsel %vm1001_vm13, %v2694_v12, 0.0  ;;  %v2717_v29 = vsel %vm1001_vm13, %v2695_v18, 0.0 }
 0x482   :  { %v2701_v23 = vrot.slane %v2700_v19, 1  ;;  %v2708_v24 = vrot.slane %v2707_v20, 1  ;;  %v2711_v27 = vrot.slane %v2710_v21, 4  ;;  %v2718_v30 = vrot.slane %v2717_v29, 4 }
 0x484   :  { %v2702_v28 = vadd.f32 %v2701_v23, %v2700_v19  ;;  %v2709_v43 = vadd.f32 %v2708_v24, %v2707_v20  ;;  %v2712_v32 = vadd.f32 %v2711_v27, %v2710_v21  ;;  %v2719_v46 = vadd.f32 %v2718_v30, %v2717_v29 }
 0x486   :  { %v2713_v33 = vrot.slane %v2712_v32, 2  ;;  %v2720_v31 = vrot.slane %v2719_v46, 2  ;;  %v2724_v34 = vsel %vm1030_vm14, %v2702_v28, 0.0  ;;  %v2725_v35 = vsel %vm1030_vm14, %v2709_v43, 0.0 }
 0x487   :  { %v2726_v37 = vadd.f32 %v2725_v35, %v2724_v34 }
 0x488   :  { %v2714_v0 = vadd.f32 %v2713_v33, %v2712_v32  ;;  %v2721_v6 = vadd.f32 %v2720_v31, %v2719_v46 }
 0x489   :  { %v2730_v15 = vmul.f32 0.25, %v2726_v37 }
 0x48a   :  { %v2715_v16 = vrot.slane %v2714_v0, 1  ;;  %v2722_v38 = vrot.slane %v2721_v6, 1 }
 0x48b   :  { %v4230_v40 = vsub.f32 %v2692_v3, %v2730_v15  ;;  %v4232_v42 = vsub.f32 %v2693_v4, %v2730_v15 }
 0x48c   :  { %v2716_v44 = vadd.f32 %v2715_v16, %v2714_v0  ;;  %v2723_v47 = vadd.f32 %v2722_v38, %v2721_v6  ;;  %v2799_v16 = vpop.permute.xlu1 %2798 }
 0x48d   :  { %v2736_v48 = vmul.f32 %v4230_v40, %v4230_v40  ;;  %v2737_v49 = vmul.f32 %v4232_v42, %v4232_v42 }
 0x48e   :  { %v2727_v52 = vsel %vm1030_vm14, %v2716_v44, 0.0  ;;  %v2728_v53 = vsel %vm1030_vm14, %v2723_v47, 0.0 }
 0x48f   :  { %v2729_v54 = vadd.f32 %v2728_v53, %v2727_v52  ;;  %v2740_v55 = vsel %vm1001_vm13, %v2736_v48, 0.0  ;;  %v2747_v57 = vsel %vm1001_vm13, %v2737_v49, 0.0 }
 0x490   :  { %v2741_v36 = vrot.slane %v2740_v55, 4  ;;  %v2748_v39 = vrot.slane %v2747_v57, 4  ;;  %v2809_v52 = vpop.permute.xlu1 %2808 }
 0x491   :  { %v2731_v51 = vmul.f32 0.25, %v2729_v54 }
 0x492   :  { %v2742_v61 = vadd.f32 %v2741_v36, %v2740_v55  ;;  %v2749_v56 = vadd.f32 %v2748_v39, %v2747_v57  ;;  %v2801_v39 = vpop.permute.xlu0 %2800 }
 0x493   :  { %v4242_v62 = vsub.f32 %v2694_v12, %v2731_v51  ;;  %v4244_v2 = vsub.f32 %v2695_v18, %v2731_v51 }
 0x494   :  { %v2743_v41 = vrot.slane %v2742_v61, 2  ;;  %v2750_v50 = vrot.slane %v2749_v56, 2 }
 0x495   :  { %v2738_v59 = vmul.f32 %v4242_v62, %v4242_v62  ;;  %v2739_v63 = vmul.f32 %v4244_v2, %v4244_v2 }
 0x496   :  { %v2744_v3 = vadd.f32 %v2743_v41, %v2742_v61  ;;  %v2751_v4 = vadd.f32 %v2750_v50, %v2749_v56 }
 0x497   :  { %v2754_v45 = vsel %vm1001_vm13, %v2738_v59, 0.0  ;;  %v2761_v5 = vsel %vm1001_vm13, %v2739_v63, 0.0 }
 0x498   :  { %v2745_v8 = vrot.slane %v2744_v3, 1  ;;  %v2752_v1 = vrot.slane %v2751_v4, 1  ;;  %v2755_v10 = vrot.slane %v2754_v45, 4  ;;  %v2762_v11 = vrot.slane %v2761_v5, 4 }
 0x49a   :  { %v2746_v13 = vadd.f32 %v2745_v8, %v2744_v3  ;;  %v2753_v14 = vadd.f32 %v2752_v1, %v2751_v4  ;;  %v2756_v7 = vadd.f32 %v2755_v10, %v2754_v45  ;;  %v2763_v58 = vadd.f32 %v2762_v11, %v2761_v5 }
 0x49c   :  { %v2757_v25 = vrot.slane %v2756_v7, 2  ;;  %v2764_v26 = vrot.slane %v2763_v58, 2  ;;  %v2768_v22 = vsel %vm1030_vm14, %v2746_v13, 0.0  ;;  %v2769_v9 = vsel %vm1030_vm14, %v2753_v14, 0.0 }
 0x49d   :  { %v2770_v60 = vadd.f32 %v2769_v9, %v2768_v22 }
 0x49e   :  { %v2758_v17 = vadd.f32 %v2757_v25, %v2756_v7  ;;  %v2765_v12 = vadd.f32 %v2764_v26, %v2763_v58 }
 0x49f   :  { %v2774_v18 = vmul.f32 0.33333334, %v2770_v60 }
 0x4a0   :  { %v2759_v19 = vrot.slane %v2758_v17, 1  ;;  %v2766_v20 = vrot.slane %v2765_v12, 1 }
 0x4a1   :  { %3181 = vrsqrt.f32 %v2774_v18  ;;  %vm2778_vm0 = vcmp.eq.f32.partialorder %v2774_v18, inf  ;;  %v2781_v32 = vand.u32 2147483648, %v2774_v18  ;;  %vm2780_vm1 = vcmp.eq.f32.partialorder %v2774_v18, 0.0 }
 0x4a2   :  { %v2760_v21 = vadd.f32 %v2759_v19, %v2758_v17  ;;  %v2767_v29 = vadd.f32 %v2766_v20, %v2765_v12 }
 0x4a4   :  { %v2771_v23 = vsel %vm1030_vm14, %v2760_v21, 0.0  ;;  %v2772_v24 = vsel %vm1030_vm14, %v2767_v29, 0.0 }
 0x4a5   :  { %v2773_v27 = vadd.f32 %v2772_v24, %v2771_v23 }
 0x4a7   :  { %v2775_v30 = vmul.f32 0.33333334, %v2773_v27 }
 0x4a9   :  { %3183 = vrsqrt.f32 %v2775_v30  ;;  %vm2785_vm2 = vcmp.eq.f32.partialorder %v2775_v30, inf  ;;  %v2788_v37 = vand.u32 2147483648, %v2775_v30  ;;  %vm2787_vm4 = vcmp.eq.f32.partialorder %v2775_v30, 0.0 }
 0x4ab   :  { %v3182_v28 = vpop.eup %3181 }
 0x4ac   :  { %v2777_v43 = vmul.f32 %v3182_v28, %v2774_v18 }
 0x4ae   :  { %v2779_v46 = vsel %vm2778_vm0, %v2774_v18, %v2777_v43 }
 0x4af   :  { %v2782_v33 = vsel %vm2780_vm1, %v2781_v32, %v2779_v46 }
 0x4b0   :  { %v2790_v31 = vadd.f32 1e-09, %v2782_v33 }
 0x4b2   :  { %3185 = vrcp.f32 %v2790_v31 }
 0x4b3   :  { %v3184_v34 = vpop.eup %3183 }
 0x4b4   :  { %v2784_v35 = vmul.f32 %v3184_v34, %v2775_v30 }
 0x4b6   :  { %v2786_v0 = vsel %vm2785_vm2, %v2775_v30, %v2784_v35 }
 0x4b7   :  { %v2789_v6 = vsel %vm2787_vm4, %v2788_v37, %v2786_v0 }
 0x4b8   :  { %v2791_v15 = vadd.f32 1e-09, %v2789_v6 }
 0x4ba   :  { %3187 = vrcp.f32 %v2791_v15 }
 0x4bc   :  { %v3186_v38 = vpop.eup %3185 }
 0x4bd   :  { %v2793_v44 = vmul.f32 %v3186_v38, %v4230_v40  ;;  %v2794_v47 = vmul.f32 %v3186_v38, %v4232_v42  ;;  %v2811_v42 = vpop.permute.xlu1 %2810 }
 0x4bf   :  { %v2804_v48 = vmul.f32 %v2799_v16, %v2793_v44  ;;  %v2805_v49 = vmul.f32 %v2799_v16, %v2794_v47 }
 0x4c1   :  { %v2814_v53 = vadd.f32 %v2809_v52, %v2804_v48  ;;  %v2815_v54 = vadd.f32 %v2809_v52, %v2805_v49 }
 0x4c3   :  { %2818 = vst.msk [vmem:[#allocation17] sm:$0x3] %vm1001_vm13, %v2814_v53  ;;  %2819 = vst.msk [vmem:[#allocation17 + $0x2] sm:$0x3] %vm1001_vm13, %v2815_v54 }
 0x4c4   :  { %v3188_v55 = vpop.eup %3187 }
 0x4c5   :  { %v2796_v57 = vmul.f32 %v3188_v55, %v4242_v62  ;;  %v2797_v36 = vmul.f32 %v3188_v55, %v4244_v2 }
 0x4c7   :  { %v2806_v40 = vmul.f32 %v2801_v39, %v2796_v57  ;;  %v2807_v51 = vmul.f32 %v2801_v39, %v2797_v36 }
 0x4c9   :  { %v2816_v61 = vadd.f32 %v2811_v42, %v2806_v40  ;;  %v2817_v56 = vadd.f32 %v2811_v42, %v2807_v51 }
 0x4cb   :  { %2820 = vst.msk [vmem:[#allocation17 + $0x4] sm:$0x3] %vm1001_vm13, %v2816_v61  ;;  %2821 = vst.msk [vmem:[#allocation17 + $0x6] sm:$0x3] %vm1001_vm13, %v2817_v56 }
 0x4cc   :  { %3398 = shalt.err (!%p3395_p6)
}
 0x4cd   :  { %s3399_s26 = scalar_lea.hbm %s4293_s14, 128 }
 0x4ce   :  { %p3400_p7 = scmp.ne.s32.totalorder %s4293_s14, %s3399_s26  ;;  %p3403_p8 = scmp.lt.u32.totalorder %s3399_s26, %s4293_s14 }
 0x4d0   :  { %p3405_p9 = pnand %p3403_p8, %p3400_p7 }
 0x4d2   :  { %3408 = shalt.err (!%p3405_p9)
}
 0x4d3   :  { %2833 = dma.vmem_to_hbm [thread:$0]  %s2828_s10, 128, %s4293_s14, [#allocation4], %s3424_s30, %s3424_s30, %s3425_s21  }
 0x4d4   :  { %3419 = dma.done.wait [#allocation4], 128  }
 0x4d5   :  { %3420 = vsyncadd [#allocation4], 4294967168 }
 0x4d6   :  { %2837 = vsyncpa [#allocation3], 1 }
 0x4d7   :  { %2838 = vsyncpa [#allocation6], 1 }
 0x4d8   :  { %2839 = vsyncpa [#allocation9], 1 }
 0x4d9   :  { %2840 = vsyncpa [#allocation12], 1 }
 0x4da   :  { %2841 = vsyncpa [#allocation15], 1 }
 0x4db   :  { %2842 = vsyncpa [#allocation4], 1 }

</bundles_post_ra>
